<compile_context>
chip_gen: v6e
topology: v6e:2x2x1
jax: 0.10.0
libtpu: 0.0.40
codegen_flags: <defaults>
</compile_context>

<pallas_src>
import functools

import jax
import jax.numpy as jnp
from jax.experimental import pallas as pl
from jax.experimental.pallas import tpu as pltpu

LANE = 128  # TPU lane width; packed feature dims are padded to a multiple of this


def _round_up(x, m):
    return ((x + m - 1) // m) * m


# ---------------------------------------------------------------------------
# Per-chip tiling parameters
# ---------------------------------------------------------------------------
def _chip_params():
    """Returns (tile_dst_target, tile working-set budget, vmem_limit_bytes)."""
    kind = ""
    try:
        kind = jax.devices()[0].device_kind.lower()
    except Exception:  # pragma: no cover - defensive
        pass
    if "v5" in kind or "v6" in kind:
        # v5e / v5p / v6e: 128 MiB physical VMEM -> big tiles, high scoped limit
        td_target = 128 if "v5" in kind else 256
        return td_target, 80 << 20, 100 << 20
    # v7x (64 MiB physical VMEM) or unknown chip: conservative budget
    return 256, 34 << 20, 52 << 20


def _choose_tiles(n_nodes, p_in, p_out, nb, stream_bytes, budget, td_target):
    """Pick (tile_dst, tile_src) with tile_dst | tile_src, both TPU-aligned."""

    def working_set(td, ts):
        return (2 * nb * td * ts * stream_bytes        # adjacency tile (dbl-buffered)
                + 2 * ts * p_in * stream_bytes         # feature tile
                + 2 * p_in * nb * p_out * stream_bytes  # wcat (resident, dbl-buffered)
                + 2 * p_in * p_out * stream_bytes       # wself
                + 2 * td * p_out * 4                    # output tile (f32 worst case)
                + td * p_out * 4                        # f32 accumulator
                + ts * nb * p_out * stream_bytes        # message scratch
                + (2 << 20))                            # slack

    if n_nodes <= 2 * td_target:
        # Small graph: one src tile; two dst tiles so v7x's 2 TCs both get work.
        n_pad = _round_up(n_nodes, 16)
        return max(n_pad // 2, 8), n_pad

    td = td_target
    ts = td
    cap = _round_up(n_nodes, td)
    for cand in (8 * td, 4 * td, 2 * td, td):
        cand = min(cand, cap)
        if working_set(td, cand) <= budget:
            ts = cand
            break
    return td, ts


# ---------------------------------------------------------------------------
# Kernel: one R-GCN layer (basis-folded), batch packed into lanes,
# block-sparse src-tile skipping via scalar-prefetched table.
#   grid = (dst_tiles [parallel], nonzero-src-tile slots [arbitrary])
# ---------------------------------------------------------------------------
def rgcn_layer_kernel(tbl_ref, cnt_ref, adj_ref, h_ref, wcat_ref, wself_ref,
                      bias_ref, out_ref, acc_ref, msg_ref, *,
                      apply_relu, use_self_loop, tile_dst, tile_src,
                      num_bases, out_width):
    d = pl.program_id(0)                  # dst-node tile (parallel / megacore)
    c = pl.program_id(1)                  # slot in the nonzero-src-tile table
    last_c = pl.num_programs(1) - 1
    valid = c < cnt_ref[d]                # padded table slots carry no data

    # (1) Accumulator init (bias) once per dst tile.  c == 0 always executes
    #     even when later slots are skipped, so the init is never lost.
    @pl.when(c == 0)
    def _init():
        acc_ref[...] = jnp.broadcast_to(bias_ref[...], acc_ref.shape)

    # (2) Optional self-loop, added when this slot's src tile holds the dst
    #     rows (host side guarantees that tile is present in the valid region).
    if use_self_loop:
        c_self = (d * tile_dst) // tile_src
        local = d * tile_dst - c_self * tile_src

        @pl.when(jnp.logical_and(valid, tbl_ref[d, c] == c_self))
        def _self_loop():
            h_dst = h_ref[pl.ds(pl.multiple_of(local, 8), tile_dst), :]
            acc_ref[...] += jnp.dot(h_dst, wself_ref[...],
                                    preferred_element_type=jnp.float32)

    # (3) Messages + aggregation, skipped entirely for padded slots.
    @pl.when(valid)
    def _aggregate():
        # One wide feature transform for all bases, single store pass.
        msg_ref[...] = jnp.dot(h_ref[...], wcat_ref[...],
                               preferred_element_type=jnp.float32
                               ).astype(msg_ref.dtype)
        # Per-basis aggregation with static lane slices (f32 accumulation).
        for bb in range(num_bases):                       # static unroll
            acc_ref[...] += jnp.dot(
                adj_ref[bb],
                msg_ref[:, bb * out_width:(bb + 1) * out_width],
                preferred_element_type=jnp.float32)

    # (4) Finalize: activation + lane-dense store.
    @pl.when(c == last_c)
    def _finalize():
        res = acc_ref[...]
        if apply_relu:
            res = jnp.maximum(res, 0.0)
        out_ref[...] = res.astype(out_ref.dtype)


def rgcn_layer_packed(adj_basis, h_packed, wcat, wself_blk, bias_pk,
                      tbl, cnt, max_nnz, *, apply_relu, use_self_loop,
                      tile_dst, tile_src, out_dtype, vmem_limit):
    """adj_basis: (nb, Np, Np)  h_packed: (Np, P_in)
       wcat: (P_in, nb*P_out)   wself_blk: (P_in, P_out)   bias_pk: (1, P_out)
       tbl: (nd, max_nnz) int32 nonzero-src-tile indices   cnt: (nd,) int32
       -> (Np, P_out) packed/padded layer output."""
    nb, Np, _ = adj_basis.shape
    P_in = h_packed.shape[1]
    P_out = wself_blk.shape[1]
    assert wcat.shape == (P_in, nb * P_out)
    assert Np % tile_dst == 0 and Np % tile_src == 0
    assert tile_src % tile_dst == 0            # needed by the self-loop path
    assert tile_dst % 8 == 0 or tile_dst == Np
    nd = Np // tile_dst

    kernel = functools.partial(
        rgcn_layer_kernel, apply_relu=apply_relu, use_self_loop=use_self_loop,
        tile_dst=tile_dst, tile_src=tile_src, num_bases=nb, out_width=P_out)

    return pl.pallas_call(
        kernel,
        out_shape=jax.ShapeDtypeStruct((Np, P_out), out_dtype),
        grid_spec=pltpu.PrefetchScalarGridSpec(
            num_scalar_prefetch=2,                   # tbl, cnt -> SMEM
            grid=(nd, max_nnz),
            in_specs=[
                # basis-folded adjacency tiles, all bases at once; src tile is
                # looked up in the prefetched nonzero-block table.
                pl.BlockSpec((nb, tile_dst, tile_src),
                             lambda d, c, t, n: (0, d, t[d, c])),
                # packed node features for the table's src tile
                pl.BlockSpec((tile_src, P_in),
                             lambda d, c, t, n: (t[d, c], 0)),
                # all basis weights concatenated on lanes (resident)
                pl.BlockSpec((P_in, nb * P_out), lambda d, c, t, n: (0, 0)),
                # block-diagonal self-loop weight (resident)
                pl.BlockSpec((P_in, P_out), lambda d, c, t, n: (0, 0)),
                # packed bias, kept f32 (resident)
                pl.BlockSpec((1, P_out), lambda d, c, t, n: (0, 0)),
            ],
            out_specs=pl.BlockSpec((tile_dst, P_out), lambda d, c, t, n: (d, 0)),
            scratch_shapes=[
                pltpu.VMEM((tile_dst, P_out), jnp.float32),          # accumulator
                pltpu.VMEM((tile_src, nb * P_out), adj_basis.dtype),  # messages
            ],
        ),
        compiler_params=pltpu.CompilerParams(
            dimension_semantics=("parallel", "arbitrary"),
            vmem_limit_bytes=vmem_limit),
    )(tbl, cnt, adj_basis, h_packed, wcat, wself_blk, bias_pk)


# ---------------------------------------------------------------------------
# Host-side packing: batch -> lanes, basis folding, block-diagonal weights,
# block-sparsity table.
# ---------------------------------------------------------------------------
def pack_features(x, n_pad, lane=LANE):
    """(B, N, C) -> (n_pad, round_up(B*C, lane)); batch packed into lanes."""
    B, N, C = x.shape
    xp = jnp.transpose(x, (1, 0, 2)).reshape(N, B * C)
    return jnp.pad(xp, ((0, n_pad - N), (0, _round_up(B * C, lane) - B * C)))


def unpack_features(xp, B, C, N):
    """(n_pad, P) -> (B, N, C); inverse of pack_features (drops padding)."""
    return xp[:N, :B * C].reshape(N, B, C).transpose(1, 0, 2)


def _block_diag(w, B, P_in, P_out):
    Cin, Cout = w.shape
    out = jnp.zeros((P_in, P_out), w.dtype)
    for b in range(B):
        out = out.at[b * Cin:(b + 1) * Cin, b * Cout:(b + 1) * Cout].set(w)
    return out


def pack_layer_params(V, coeff, wself, bias, adj_rel_pad, B, stream_dtype,
                      lane=LANE):
    """Fold the basis decomposition into the (padded) adjacency and build
    lane-packed block-diagonal per-batch weights, cast to the stream dtype.

      V: (nb, Cin, Cout)  coeff: (R, nb)  wself: (Cin, Cout)  bias: (Cout,)
      adj_rel_pad: (R, Np, Np)
    Returns adj_basis (nb,Np,Np), wcat (P_in, nb*P_out), wself_blk (P_in,P_out),
    bias_pk (1,P_out)."""
    nb, Cin, Cout = V.shape
    P_in, P_out = _round_up(B * Cin, lane), _round_up(B * Cout, lane)
    wcat = jnp.concatenate(
        [_block_diag(V[s], B, P_in, P_out) for s in range(nb)],
        axis=1).astype(stream_dtype)
    wself_blk = _block_diag(wself, B, P_in, P_out).astype(stream_dtype)
    bias_pk = jnp.pad(jnp.tile(bias.reshape(1, -1), (1, B)),
                      ((0, 0), (0, P_out - B * Cout))).astype(jnp.float32)
    # exact identity: sum_r A_r @ (H @ W_r) = sum_s (sum_r a[r,s] A_r) @ (H @ V_s)
    adj_basis = jnp.einsum("rs,rij->sij", coeff, adj_rel_pad).astype(stream_dtype)
    return adj_basis, wcat, wself_blk, bias_pk


def build_block_table(adj_rel_pad, tile_dst, tile_src, use_self_loop):
    """Per-dst-tile list of nonzero src tiles (union over relations).

    Returns (tbl (nd, max_nnz) int32, cnt (nd,) int32, max_nnz int).
    Padded slots repeat already-listed tiles and are gated off in the kernel.
    NOTE: must run on concrete (non-traced) arrays — max_nnz sizes the grid."""
    R, Np, _ = adj_rel_pad.shape
    nd, nc = Np // tile_dst, Np // tile_src
    blk = (jnp.abs(adj_rel_pad)
           .reshape(R, nd, tile_dst, nc, tile_src)
           .sum(axis=(0, 2, 4)) > 0)                       # (nd, nc)
    if use_self_loop:
        # make sure the tile holding each dst tile's own rows is visited
        d_idx = jnp.arange(nd)
        blk = blk.at[d_idx, (d_idx * tile_dst) // tile_src].set(True)
    cnt = blk.sum(axis=1).astype(jnp.int32)
    max_nnz = max(int(cnt.max()), 1)
    order = jnp.argsort(jnp.where(blk, 0, 1), axis=1).astype(jnp.int32)
    tbl = order[:, :max_nnz]
    return tbl, cnt, max_nnz


def base_rgcn_forward(inputs, adj_rel, params, *, use_self_loop=False,
                      stream_dtype=jnp.bfloat16, tile_dst=None, tile_src=None):
    """BaseRGCN.forward: layer0 (i_dim->h_dim, ReLU) then layer1 (h_dim->out_dim)."""
    B, N, i_dim = inputs.shape
    h_dim = params["V0"].shape[2]
    out_dim = params["V1"].shape[2]
    nb = params["V0"].shape[0]
    # Module contract: forward writes the layer-1 result into a clone of inputs.
    assert out_dim == i_dim, "BaseRGCN.forward requires out_dim == i_dim"

    P_in0 = _round_up(B * i_dim, LANE)
    P_h = _round_up(B * h_dim, LANE)
    P_out = _round_up(B * out_dim, LANE)
    sb = jnp.dtype(stream_dtype).itemsize

    td_target, budget, vmem_limit = _chip_params()
    if tile_dst is None or tile_src is None:
        a_td, a_ts = _choose_tiles(N, max(P_in0, P_h), max(P_h, P_out), nb,
                                   sb, budget, td_target)
        tile_dst = tile_dst if tile_dst is not None else a_td
        tile_src = tile_src if tile_src is not None else a_ts

    n_pad = _round_up(max(N, tile_src), tile_src)
    assert tile_src % tile_dst == 0
    assert tile_dst % 8 == 0 or tile_dst == n_pad

    # pad the per-relation adjacency once; padded rows/cols are zero so padded
    # nodes never contribute to (or receive from) real nodes.
    adj_pad = jnp.pad(adj_rel, ((0, 0), (0, n_pad - N), (0, n_pad - N)))
    tbl, cnt, max_nnz = build_block_table(adj_pad, tile_dst, tile_src,
                                          use_self_loop)

    adjb0, wcat0, wself0, b0 = pack_layer_params(
        params["V0"], params["a0"], params["wself0"], params["b0"],
        adj_pad, B, stream_dtype)
    adjb1, wcat1, wself1, b1 = pack_layer_params(
        params["V1"], params["a1"], params["wself1"], params["b1"],
        adj_pad, B, stream_dtype)

    x = pack_features(inputs.astype(stream_dtype), n_pad)          # (n_pad, P_in0)
    h = rgcn_layer_packed(adjb0, x, wcat0, wself0, b0, tbl, cnt, max_nnz,
                          apply_relu=True, use_self_loop=use_self_loop,
                          tile_dst=tile_dst, tile_src=tile_src,
                          out_dtype=stream_dtype, vmem_limit=vmem_limit)
    # packed/padded intermediate feeds layer 1 directly (padded lanes are zero)
    out = rgcn_layer_packed(adjb1, h, wcat1, wself1, b1, tbl, cnt, max_nnz,
                            apply_relu=False, use_self_loop=use_self_loop,
                            tile_dst=tile_dst, tile_src=tile_src,
                            out_dtype=jnp.float32, vmem_limit=vmem_limit)
    return unpack_features(out, B, out_dim, N)


# ---------------------------------------------------------------------------
# Pure-JAX reference (unfolded basis, per-relation) for correctness check.
# ---------------------------------------------------------------------------
def _ref_layer(adj_rel, h, V, coeff, wself, bias, apply_relu, use_self_loop):
    w = jnp.einsum("rs,sio->rio", coeff, V)                 # (R, Cin, Cout)
    hw = jnp.einsum("bni,rio->brno", h, w)
    agg = jnp.einsum("rij,brjo->bio", adj_rel, hw)
    if use_self_loop:
        agg = agg + jnp.einsum("bni,io->bno", h, wself)
    agg = agg + bias.reshape(1, 1, -1)
    return jnp.maximum(agg, 0.0) if apply_relu else agg


if __name__ == "__main__":
    # Small, BaseRGCN-consistent shapes (but large enough to exercise tiling,
    # block skipping and the self-loop path).
    B, N = 2, 256                # batch, num_nodes
    i_dim, h_dim = 8, 32         # input / hidden feature dims
    out_dim = i_dim              # forward writes result into clone(inputs)
    num_rels, num_bases = 4, 2
    num_edges = 512

    key = jax.random.PRNGKey(0)
    keys = jax.random.split(key, 12)

    # --- graph (g, edge_type, edge_norm) folded into dense per-relation adjacency.
    # Sources confined to the first half of the nodes so some (dst,src) blocks
    # are empty and the block-sparse skipping path is actually exercised.
    src = jax.random.randint(keys[0], (num_edges,), 0, N // 2)
    dst = jax.random.randint(keys[1], (num_edges,), 0, N)
    etype = jax.random.randint(keys[2], (num_edges,), 0, num_rels)
    edge_norm = jax.random.uniform(keys[3], (num_edges,), jnp.float32, 0.1, 1.0)
    adj_rel = jnp.zeros((num_rels, N, N), jnp.float32).at[etype, dst, src].add(edge_norm)

    # --- parameters (basis decomposition kept explicit: V and coefficients a)
    params = {
        "V0": jax.random.normal(keys[4], (num_bases, i_dim, h_dim), jnp.float32) * 0.1,
        "a0": jax.random.normal(keys[5], (num_rels, num_bases), jnp.float32) * 0.1,
        "wself0": jax.random.normal(keys[6], (i_dim, h_dim), jnp.float32) * 0.1,
        "b0": jax.random.normal(keys[7], (h_dim,), jnp.float32) * 0.01,
        "V1": jax.random.normal(keys[8], (num_bases, h_dim, out_dim), jnp.float32) * 0.1,
        "a1": jax.random.normal(keys[9], (num_rels, num_bases), jnp.float32) * 0.1,
        "wself1": jax.random.normal(keys[10], (h_dim, out_dim), jnp.float32) * 0.1,
        "b1": jax.random.normal(keys[11], (out_dim,), jnp.float32) * 0.01,
    }

    # --- inputs: (B, num_nodes, i_dim) node features per batch element ---
    inputs = jax.random.normal(jax.random.PRNGKey(42), (B, N, i_dim), jnp.float32)

    # pure-JAX references (per-relation, unfolded basis)
    h_ref0 = _ref_layer(adj_rel, inputs, params["V0"], params["a0"],
                        params["wself0"], params["b0"], True, False)
    o_ref0 = _ref_layer(adj_rel, h_ref0, params["V1"], params["a1"],
                        params["wself1"], params["b1"], False, False)
    h_ref1 = _ref_layer(adj_rel, inputs, params["V0"], params["a0"],
                        params["wself0"], params["b0"], True, True)
    o_ref1 = _ref_layer(adj_rel, h_ref1, params["V1"], params["a1"],
                        params["wself1"], params["b1"], False, True)

    # 1) default fast path: bf16 streaming, auto-chosen per-chip tiles
    out_bf16 = base_rgcn_forward(inputs, adj_rel, params, use_self_loop=False)
    out_bf16 = jax.block_until_ready(out_bf16)
    assert out_bf16.shape == (B, N, out_dim)
    tol = 5e-2 * float(jnp.max(jnp.abs(o_ref0))) + 1e-5
    assert bool(jnp.allclose(out_bf16, o_ref0, atol=tol, rtol=5e-2)), \
        "bf16 path mismatch"

    # 2) exactness check: f32 streaming, explicit small tiles (nd=4, nc=2) so
    #    the block-skip table has empty + padded + forced-self-loop entries.
    out_f32 = base_rgcn_forward(inputs, adj_rel, params, use_self_loop=True,
                                stream_dtype=jnp.float32,
                                tile_dst=64, tile_src=128)
    out_f32 = jax.block_until_ready(out_f32)
    assert out_f32.shape == (B, N, out_dim)
    assert bool(jnp.allclose(out_f32, o_ref1, atol=2e-3, rtol=2e-3)), \
        "f32 path mismatch"

    print("KERNEL_OK")
</pallas_src>

<mosaic_0001>
module attributes {stable_mosaic.version = 11 : i64} {
  func.func @rgcn_layer_kernel(%arg0: i32, %arg1: i32, %arg2: memref<2x1xi32, #tpu.memory_space<smem>>, %arg3: memref<2xi32, #tpu.memory_space<smem>>, %arg4: memref<2x128x256xbf16, #tpu.memory_space<vmem>>, %arg5: memref<256x128xbf16, #tpu.memory_space<vmem>>, %arg6: memref<128x256xbf16, #tpu.memory_space<vmem>>, %arg7: memref<128x128xbf16, #tpu.memory_space<vmem>>, %arg8: memref<1x128xf32, #tpu.memory_space<vmem>>, %arg9: memref<128x128xbf16, #tpu.memory_space<vmem>>, %arg10: memref<128x128xf32, #tpu.memory_space<vmem>>, %arg11: memref<256x256xbf16, #tpu.memory_space<vmem>>) attributes {dimension_semantics = [#tpu.dimension_semantics<parallel>, #tpu.dimension_semantics<arbitrary>], iteration_bounds = array<i64: 2, 1>, scalar_prefetch = 2 : i64, scratch_operands = 2 : i64, tpu.core_type = #tpu.core_type<tc>, window_params = [{transform_indices = @transform_0, window_bounds = array<i64: 2, 128, 256>}, {transform_indices = @transform_1, window_bounds = array<i64: 256, 128>}, {pipeline_mode = #tpu.pipeline_mode<synchronous>, transform_indices = @transform_2, window_bounds = array<i64: 128, 256>}, {pipeline_mode = #tpu.pipeline_mode<synchronous>, transform_indices = @transform_3, window_bounds = array<i64: 128, 128>}, {pipeline_mode = #tpu.pipeline_mode<synchronous>, transform_indices = @transform_4, window_bounds = array<i64: 1, 128>}, {transform_indices = @transform_5, window_bounds = array<i64: 128, 128>}]} {
    %0 = arith.index_cast %arg0 : i32 to index
    %1 = memref.load %arg3[%0] : memref<2xi32, #tpu.memory_space<smem>>
    %2 = arith.cmpi slt, %arg1, %1 : i32
    %c0_i32 = arith.constant 0 : i32
    %3 = arith.cmpi eq, %arg1, %c0_i32 : i32
    %4 = arith.extui %3 : i1 to i32
    %c0_i32_0 = arith.constant 0 : i32
    %5 = arith.cmpi ne, %4, %c0_i32_0 : i32
    scf.if %5 {
      %c0 = arith.constant 0 : index
      %c0_4 = arith.constant 0 : index
      %11 = vector.load %arg8[%c0, %c0_4] : memref<1x128xf32, #tpu.memory_space<vmem>>, vector<1x128xf32>
      %12 = vector.shape_cast %11 : vector<1x128xf32> to vector<1x128xf32>
      %13 = vector.broadcast %12 : vector<1x128xf32> to vector<128x128xf32>
      %c0_5 = arith.constant 0 : index
      %c0_6 = arith.constant 0 : index
      %14 = vector.load %arg10[%c0_5, %c0_6] : memref<128x128xf32, #tpu.memory_space<vmem>>, vector<128x128xf32>
      tpu.vector_store %arg10[%c0_5, %c0_6], %13 {strides = array<i32>} : memref<128x128xf32, #tpu.memory_space<vmem>>, vector<128x128xf32>,
    } else {
    }
    %6 = arith.extui %2 : i1 to i32
    %c0_i32_1 = arith.constant 0 : i32
    %7 = arith.cmpi ne, %6, %c0_i32_1 : i32
    scf.if %7 {
      %c0 = arith.constant 0 : index
      %c0_4 = arith.constant 0 : index
      %11 = vector.load %arg5[%c0, %c0_4] : memref<256x128xbf16, #tpu.memory_space<vmem>>, vector<256x128xbf16>
      %c0_5 = arith.constant 0 : index
      %c0_6 = arith.constant 0 : index
      %12 = vector.load %arg6[%c0_5, %c0_6] : memref<128x256xbf16, #tpu.memory_space<vmem>>, vector<128x256xbf16>
      %cst = arith.constant dense<0.000000e+00> : vector<256x256xf32>
      %13 = tpu.matmul %11, %12, %cst {dimension_numbers = #tpu.dot_dimension_numbers<[1], [0], [0], [1], [0, 0, 1, 1], [], []>} : vector<256x128xbf16>, vector<128x256xbf16>, vector<256x256xf32> -> vector<256x256xf32>
      %14 = arith.truncf %13 : vector<256x256xf32> to vector<256x256xbf16>
      %c0_7 = arith.constant 0 : index
      %c0_8 = arith.constant 0 : index
      %15 = vector.load %arg11[%c0_7, %c0_8] : memref<256x256xbf16, #tpu.memory_space<vmem>>, vector<256x256xbf16>
      tpu.vector_store %arg11[%c0_7, %c0_8], %14 {strides = array<i32>} : memref<256x256xbf16, #tpu.memory_space<vmem>>, vector<256x256xbf16>,
      %c0_9 = arith.constant 0 : index
      %c0_10 = arith.constant 0 : index
      %16 = vector.load %arg10[%c0_9, %c0_10] : memref<128x128xf32, #tpu.memory_space<vmem>>, vector<128x128xf32>
      %c0_11 = arith.constant 0 : index
      %c0_12 = arith.constant 0 : index
      %c0_13 = arith.constant 0 : index
      %17 = vector.load %arg4[%c0_11, %c0_12, %c0_13] : memref<2x128x256xbf16, #tpu.memory_space<vmem>>, vector<1x128x256xbf16>
      %18 = vector.shape_cast %17 : vector<1x128x256xbf16> to vector<128x256xbf16>
      %c0_14 = arith.constant 0 : index
      %c0_15 = arith.constant 0 : index
      %19 = vector.load %arg11[%c0_14, %c0_15] : memref<256x256xbf16, #tpu.memory_space<vmem>>, vector<256x128xbf16>
      %cst_16 = arith.constant dense<0.000000e+00> : vector<128x128xf32>
      %20 = tpu.matmul %18, %19, %cst_16 {dimension_numbers = #tpu.dot_dimension_numbers<[1], [0], [0], [1], [0, 0, 1, 1], [], []>} : vector<128x256xbf16>, vector<256x128xbf16>, vector<128x128xf32> -> vector<128x128xf32>
      %21 = arith.addf %16, %20 : vector<128x128xf32>
      %c0_17 = arith.constant 0 : index
      %c0_18 = arith.constant 0 : index
      %22 = vector.load %arg10[%c0_17, %c0_18] : memref<128x128xf32, #tpu.memory_space<vmem>>, vector<128x128xf32>
      tpu.vector_store %arg10[%c0_17, %c0_18], %21 {strides = array<i32>} : memref<128x128xf32, #tpu.memory_space<vmem>>, vector<128x128xf32>,
      %c0_19 = arith.constant 0 : index
      %c0_20 = arith.constant 0 : index
      %23 = vector.load %arg10[%c0_19, %c0_20] : memref<128x128xf32, #tpu.memory_space<vmem>>, vector<128x128xf32>
      %c1 = arith.constant 1 : index
      %c0_21 = arith.constant 0 : index
      %c0_22 = arith.constant 0 : index
      %24 = vector.load %arg4[%c1, %c0_21, %c0_22] : memref<2x128x256xbf16, #tpu.memory_space<vmem>>, vector<1x128x256xbf16>
      %25 = vector.shape_cast %24 : vector<1x128x256xbf16> to vector<128x256xbf16>
      %c0_23 = arith.constant 0 : index
      %c128 = arith.constant 128 : index
      %26 = vector.load %arg11[%c0_23, %c128] : memref<256x256xbf16, #tpu.memory_space<vmem>>, vector<256x128xbf16>
      %cst_24 = arith.constant dense<0.000000e+00> : vector<128x128xf32>
      %27 = tpu.matmul %25, %26, %cst_24 {dimension_numbers = #tpu.dot_dimension_numbers<[1], [0], [0], [1], [0, 0, 1, 1], [], []>} : vector<128x256xbf16>, vector<256x128xbf16>, vector<128x128xf32> -> vector<128x128xf32>
      %28 = arith.addf %23, %27 : vector<128x128xf32>
      %c0_25 = arith.constant 0 : index
      %c0_26 = arith.constant 0 : index
      %29 = vector.load %arg10[%c0_25, %c0_26] : memref<128x128xf32, #tpu.memory_space<vmem>>, vector<128x128xf32>
      tpu.vector_store %arg10[%c0_25, %c0_26], %28 {strides = array<i32>} : memref<128x128xf32, #tpu.memory_space<vmem>>, vector<128x128xf32>,
    } else {
    }
    %c0_i32_2 = arith.constant 0 : i32
    %8 = arith.cmpi eq, %arg1, %c0_i32_2 : i32
    %9 = arith.extui %8 : i1 to i32
    %c0_i32_3 = arith.constant 0 : i32
    %10 = arith.cmpi ne, %9, %c0_i32_3 : i32
    scf.if %10 {
      %c0 = arith.constant 0 : index
      %c0_4 = arith.constant 0 : index
      %11 = vector.load %arg10[%c0, %c0_4] : memref<128x128xf32, #tpu.memory_space<vmem>>, vector<128x128xf32>
      %cst = arith.constant 0.000000e+00 : f32
      %12 = vector.broadcast %cst : f32 to vector<128x128xf32>
      %13 = arith.maximumf %11, %12 : vector<128x128xf32>
      %14 = arith.truncf %13 : vector<128x128xf32> to vector<128x128xbf16>
      %c0_5 = arith.constant 0 : index
      %c0_6 = arith.constant 0 : index
      %15 = vector.load %arg9[%c0_5, %c0_6] : memref<128x128xbf16, #tpu.memory_space<vmem>>, vector<128x128xbf16>
      tpu.vector_store %arg9[%c0_5, %c0_6], %14 {strides = array<i32>} : memref<128x128xbf16, #tpu.memory_space<vmem>>, vector<128x128xbf16>,
    } else {
    }
    return
  }
  func.func @transform_0(%arg0: i32, %arg1: i32, %arg2: memref<2x1xi32, #tpu.memory_space<smem>>, %arg3: memref<2xi32, #tpu.memory_space<smem>>) -> (i32, i32, i32) {
    %0 = arith.index_cast %arg0 : i32 to index
    %1 = arith.index_cast %arg1 : i32 to index
    %2 = memref.load %arg2[%0, %1] : memref<2x1xi32, #tpu.memory_space<smem>>
    %c0_i32 = arith.constant 0 : i32
    %c0_i32_0 = arith.constant 0 : i32
    return %c0_i32, %arg0, %2 : i32, i32, i32
  }
  func.func @transform_1(%arg0: i32, %arg1: i32, %arg2: memref<2x1xi32, #tpu.memory_space<smem>>, %arg3: memref<2xi32, #tpu.memory_space<smem>>) -> (i32, i32) {
    %0 = arith.index_cast %arg0 : i32 to index
    %1 = arith.index_cast %arg1 : i32 to index
    %2 = memref.load %arg2[%0, %1] : memref<2x1xi32, #tpu.memory_space<smem>>
    %c0_i32 = arith.constant 0 : i32
    %c0_i32_0 = arith.constant 0 : i32
    return %2, %c0_i32 : i32, i32
  }
  func.func @transform_2(%arg0: i32, %arg1: i32, %arg2: memref<2x1xi32, #tpu.memory_space<smem>>, %arg3: memref<2xi32, #tpu.memory_space<smem>>) -> (i32, i32) {
    %c0_i32 = arith.constant 0 : i32
    %c0_i32_0 = arith.constant 0 : i32
    %c0_i32_1 = arith.constant 0 : i32
    return %c0_i32, %c0_i32_0 : i32, i32
  }
  func.func @transform_3(%arg0: i32, %arg1: i32, %arg2: memref<2x1xi32, #tpu.memory_space<smem>>, %arg3: memref<2xi32, #tpu.memory_space<smem>>) -> (i32, i32) {
    %c0_i32 = arith.constant 0 : i32
    %c0_i32_0 = arith.constant 0 : i32
    %c0_i32_1 = arith.constant 0 : i32
    return %c0_i32, %c0_i32_0 : i32, i32
  }
  func.func @transform_4(%arg0: i32, %arg1: i32, %arg2: memref<2x1xi32, #tpu.memory_space<smem>>, %arg3: memref<2xi32, #tpu.memory_space<smem>>) -> (i32, i32) {
    %c0_i32 = arith.constant 0 : i32
    %c0_i32_0 = arith.constant 0 : i32
    %c0_i32_1 = arith.constant 0 : i32
    return %c0_i32, %c0_i32_0 : i32, i32
  }
  func.func @transform_5(%arg0: i32, %arg1: i32, %arg2: memref<2x1xi32, #tpu.memory_space<smem>>, %arg3: memref<2xi32, #tpu.memory_space<smem>>) -> (i32, i32) {
    %c0_i32 = arith.constant 0 : i32
    %c0_i32_0 = arith.constant 0 : i32
    return %arg0, %c0_i32 : i32, i32
  }
}

</mosaic_0001>

<bundles_post_ra>
// kernel: tpu_custom_call.1
= control target key start
LH: loop header
LB: loop body
LE: loop exit
PB: predicated region body
PF: predicated region fallthrough
CT: control target
= control target key end

     0   :  { %s3587_s0 = inlined_call_operand.vmem [shape: s32[2,1], index: 0, kind: input, shape index: {}]   ;;  %s3588_s2 = inlined_call_operand.hbm [shape: bf16[2,256,256], index: 2, kind: input, shape index: {}]   ;;  %s3589_s3 = inlined_call_operand.hbm [shape: bf16[256,128], index: 3, kind: input, shape index: {}]   ;;  %s3590_s4 = inlined_call_operand.hbm [shape: bf16[128,256], index: 4, kind: input, shape index: {}]   ;;  %s3591_s5 = inlined_call_operand.hbm [shape: bf16[128,128], index: 5, kind: input, shape index: {}]   ;;  %s3592_s6 = inlined_call_operand.vmem [shape: f32[1,128], index: 6, kind: input, shape index: {}]   ;;  %s3593_s7 = inlined_call_operand.hbm [shape: bf16[256,128], index: 7, kind: output, shape index: {}]   ;;  %s3594_s1 = inlined_call_operand.vmem [shape: s32[2], index: 1, kind: input, shape index: {}]  }
   0x1   :  { %3611 = sst [smem:[#allocation39_spill]] %s3590_s4  ;;  %s12_s26 = sshll.u32 %s3587_s0, 4  ;;  %s13_s26 = int_to_ptr.vmem [resolvable:$true] %s12_s26 }
   0x2   :  { %3612 = sst [smem:[#allocation40_spill]] %s3591_s5  ;;  %s16_s29 = sshll.u32 %s3594_s1, 4  ;;  %s17_s29 = int_to_ptr.vmem [resolvable:$true] %s16_s29 }
   0x3   :  { %3613 = sst [smem:[#allocation41_spill]] %s3592_s6  ;;  %s2800_s30 = scalar_lea.vmem %s13_s26, 32 }
   0x4   :  { %3614 = sst [smem:[#allocation42_spill]] %s3593_s7  ;;  %p2801_p0 = scmp.ne.s32.totalorder %s13_s26, %s2800_s30 }
   0x5   :  { %p2805_p1 = scmp.lt.s32.totalorder %s13_s26, %s13_s26  ;;  %p2806_p2 = scmp.lt.s32.totalorder %s2800_s30, %s2800_s30 }
   0x7   :  { %p2807_p3 = por %p2806_p2, %p2805_p1 }
   0x9   :  { %p2808_p4 = pnand %p2807_p3, %p2801_p0 }
   0xb   :  { %2811 = shalt.err (!%p2808_p4)  }
   0xc   :  { %s3046_s8 = smov [#allocation5]   ;;  %s2812_s9 = scalar_lea.vmem %s17_s29, 16 }
   0xd   :  { %15 = dma.vmem_to_smem %s13_s26, 32, %s3046_s8, [#allocation4] }
   0xe   :  { %p2813_p5 = scmp.ne.s32.totalorder %s17_s29, %s2812_s9  ;;  %p2817_p6 = scmp.lt.s32.totalorder %s17_s29, %s17_s29 }
   0xf   :  { %p2818_p7 = scmp.lt.s32.totalorder %s2812_s9, %s2812_s9 }
  0x11   :  { %p2819_p8 = por %p2818_p7, %p2817_p6 }
  0x13   :  { %p2820_p9 = pnand %p2819_p8, %p2813_p5 }
  0x15   :  { %2823 = shalt.err (!%p2820_p9)  }
  0x16   :  { %s3047_s0 = smov [#allocation6]  }
  0x17   :  { %19 = dma.vmem_to_smem %s17_s29, 16, %s3047_s0, [#allocation4] }
  0x18   :  { %2976 = dma.done.wait [#allocation4], 48 }
  0x19   :  { %2977 = vsyncadd [#allocation4], 4294967248 }
  0x1a   :  { %21 = sfence }
  0x1b   :  { %22 = vsyncpa [#allocation8], 0 }
  0x1c   :  { %24 = vsyncpa [#allocation8 + $0x1], 0 }
  0x1d   :  { %25 = vsyncpa [#allocation11], 0 }
  0x1e   :  { %27 = vsyncpa [#allocation11 + $0x1], 0 }
  0x1f   :  { %28 = vsyncpa [#allocation14], 0 }
  0x20   :  { %29 = vsyncpa [#allocation9], 0 }
  0x21   :  { %31 = vsyncpa [#allocation9 + $0x1], 0  ;;  %s3113_s1 = smov 0   ;;  %s3115_s10 = smov 0  }
  0x22   :  { %s3117_s11 = smov 0   ;;  %s3119_s12 = smov 0  }
  0x23   :  { %s3121_s13 = smov 0   ;;  %s3123_s14 = smov 0  }
  0x24   :  { %s3125_s15 = smov 0   ;;  %s3127_s16 = smov 0  }
  0x25   :  { %s3129_s17 = smov 0   ;;  %s3131_s18 = smov 0  }
  0x26   :  { %s3133_s19 = smov 0   ;;  %s3135_s20 = smov 0  }
  0x27 LB: > { %3615 = sst [smem:[#allocation27_spill]] %s3000_s1  ;;  %s3172_s21 = sadd.s32 4294967295, %s3044_s20   ;;  %s3044_s20 = sphi %s3135_s20, %s37_s20   ;;  %s3040_s19 = sphi %s3133_s19, %s3663_s19   ;;  %s3036_s18 = sphi %s3131_s18, %s3662_s18   ;;  %s3032_s17 = sphi %s3129_s17, %s3661_s17   ;;  %s3028_s16 = sphi %s3127_s16, %s3669_s16   ;;  %s3024_s15 = sphi %s3125_s15, %s3668_s15   ;;  %s3020_s14 = sphi %s3123_s14, %s3667_s14   ;;  %s3016_s13 = sphi %s3121_s13, %s3666_s13   ;;  %s3012_s12 = sphi %s3119_s12, %s3658_s12   ;;  %s3008_s11 = sphi %s3117_s11, %s3657_s11   ;;  %s3004_s10 = sphi %s3115_s10, %s3665_s10   ;;  %s3000_s1 = sphi %s3113_s1, %s3664_s1  }
  0x28   : > { %3616 = sst [smem:[#allocation28_spill]] %s3008_s11  ;;  %s49_s23 = sadd.s32 1, %s3040_s19 }
  0x29   : > { %3617 = sst [smem:[#allocation29_spill]] %s3016_s13  ;;  %s3177_s24 = sshll.u32 %s3040_s19, 7 }
  0x2a   : > { %3618 = sst [smem:[#allocation30_spill]] %s3032_s17  ;;  %p51_p10 = scmp.ge.s32.totalorder %s49_s23, 2 }
  0x2b   : > { %3619 = sst [smem:[#allocation31_spill]] %s3036_s18  ;;  %s74_s26 = sadd.s32 1, %s3032_s17 }
  0x2c   : > { %3620 = sst [smem:[#allocation32_spill]] %s3040_s19  ;;  %p81_p11 = scmp.ne.s32.totalorder %s3032_s17, %s3028_s16 }
  0x2d   : > { %s60_s25 = sld [smem:[#allocation5 + %s3177_s24]]  ;;  %s3671_s23 = smov (%p51_p10, %s49_s23), 0 }
  0x2e   : > { %3621 = sst [smem:[#allocation33_spill]] %s3671_s23  ;;  %p82_p12 = scmp.eq.s32.totalorder %s3044_s20, 0 }
  0x2f   : > { %p87_p13 = scmp.ne.s32.totalorder %s3028_s16, %s3024_s15  ;;  %s2105_s27 = sshll.u32 %s3671_s23, 7 }
  0x30   : > { %s69_s28 = ssub.s32 %s3040_s19, %s3671_s23  ;;  %s68_s29 = sld [smem:[#allocation5 + %s2105_s27]] }
  0x31   : > { %p3192_p0 = por %p82_p12, %p81_p11  ;;  %p3601_p1 = scmp.eq.s32.totalorder %s3172_s21, 0 }
  0x32   : > { %s104_s8 = sld [smem:[#allocation5 + %s3177_s24]]  ;;  %s116_s0 = sadd.s32 1, %s3020_s14 }
  0x33   : > { %s112_s9 = sld [smem:[#allocation5 + %s2105_s27]]  ;;  %p3201_p2 = por %p3601_p1, %p87_p13 }
  0x34   : > { %p123_p3 = scmp.ne.s32.totalorder %s3020_s14, %s3016_s13  ;;  %p129_p4 = scmp.ne.s32.totalorder %s3016_s13, %s3012_s12 }
  0x35   : > { %s3623_s15 = scalar_select %p3201_p2, 1, 0 }
  0x36   : > { %p203_p5 = scmp.eq.s32.totalorder %s69_s28, 0  ;;  %p3211_p6 = por %p123_p3, %p82_p12 }
  0x37   : > { %3624 = sst [smem:[#allocation34_spill]] %s3623_s15  ;;  %s205_s27 = sadd.s32 1, %s3008_s11 }
  0x38   : > { %s70_s23 = ssub.s32 %s60_s25, %s68_s29  ;;  %p3218_p7 = por %p129_p4, %p3601_p1 }
  0x39   : > { %s71_s6 = sor.u32 %s70_s23, %s69_s28  ;;  %p215_p8 = scmp.ne.s32.totalorder %s3008_s11, %s3004_s10 }
  0x3a   : > { %s3626_s7 = scalar_select %p3218_p7, 1, 0 }
  0x3b   : > { %p72_p9 = scmp.eq.s32.totalorder %s71_s6, 0  ;;  %s113_s12 = ssub.s32 %s104_s8, %s112_s9 }
  0x3c   : > { %p114_p10 = scmp.eq.s32.totalorder %s113_s12, 0  ;;  %p216_p11 = scmp.eq.s32.totalorder %s3172_s21, 1 }
  0x3d   : > { %s3226_s18 = scalar_select %p72_p9, %s3032_s17, %s74_s26  }
  0x3e   : > { %s3229_s13 = scalar_select %p114_p10, %s3020_s14, %s116_s0  }
  0x3f   : > { %3627 = sst [smem:[#allocation35_spill]] %s3226_s18  ;;  %p3234_p12 = por %p216_p11, %p215_p8 }
  0x40   : > { %3628 = sst [smem:[#allocation36_spill]] %s3229_s13  ;;  %p221_p13 = scmp.ne.s32.totalorder %s3004_s10, %s3000_s1 }
  0x41   : > { %s3232_s15 = scalar_select %p203_p5, %s3008_s11, %s205_s27  }
  0x42   : > { %s3630_s25 = scalar_select %p3234_p12, 1, 0 }
  0x43   : > { %3629 = sst [smem:[#allocation37_spill]] %s3232_s15  ;;  %s3631_s29 = sadd.s32 4294967294, %s3044_s20  }
  0x44   : > { %p222_p3 = scmp.eq.s32.totalorder %s3631_s29, 1  ;;  %p2108_p4 = scmp.ge.s32.totalorder %s3044_s20, 1 }
  0x45   : > { %p229_p1 = scmp.lt.s32.totalorder %s3044_s20, 3  ;;  %s3048_s26 = smov [#allocation12]  }
  0x46   : > { %p3244_p7 = por %p222_p3, %p221_p13  ;;  %s241_s28 = sshll.u32 %s3048_s26, 4  ;;  %s242_s28 = int_to_ptr.vmem [resolvable:$true] %s241_s28 }
  0x47   : > { %p3248_p2 = pnand %p2108_p4, %p229_p1  ;;  %p3635_p8 = scmp.eq.s32.totalorder %s3172_s21, 0 }
  0x48   : > { %s3632_s6 = scalar_select %p3244_p7, 1, 0 }
  0x49   : > { %s3634_s23 = scalar_select %p3248_p2, 1, 0 }
  0x4a   : > { %3633 = sst [smem:[#allocation38_spill]] %s3632_s6  ;;  %p2549_p5 = pneg %p3248_p2 }
  0x4b   : > { %s3049_s9 = smov [#allocation13]   ;;  %s2835_s27 = scalar_lea.vmem %s242_s28, 2048 }
  0x4c   : > { %p3256_p9 = pnand %p2549_p5, %p3635_p8  ;;  %s254_s0 = sshll.u32 %s3049_s9, 4  ;;  %s255_s0 = int_to_ptr.vmem [resolvable:$true] %s254_s0 }
  0x4d   : > { %p2836_p10 = scmp.ne.s32.totalorder %s242_s28, %s2835_s27  ;;  %p2843_p3 = scmp.lt.s32.totalorder %s242_s28, %s242_s28 }
  0x4e   : > { %p2826_p1 = pneg %p3256_p9  ;;  %p2844_p4 = scmp.lt.s32.totalorder %s2835_s27, %s2835_s27 }
  0x50   : > { %p2838_p11 = pnand %p2836_p10, %p2826_p1  ;;  %p2845_p7 = por %p2844_p4, %p2843_p3 }
  0x52   : > { %p2839_p13 = pneg %p2838_p11 }
  0x54   : > { %p2846_p5 = pnand %p2845_p7, %p2839_p13 }
  0x56   : > { %2849 = shalt.err (!%p2846_p5)
}
  0x57   : > { %s3050_s12 = smov 128   ;;  %s3051_s29 = smov 8  }
  0x58   : > { %s3637_s4 = sld [smem:[#allocation39_spill]]  ;;  %s2861_s18 = scalar_lea.vmem %s255_s0, 1024 }
  0x59   : > { %p2862_p8 = scmp.ne.s32.totalorder %s255_s0, %s2861_s18  ;;  %p2869_p12 = scmp.lt.s32.totalorder %s255_s0, %s255_s0 }
  0x5a   : > { %p2870_p2 = scmp.lt.s32.totalorder %s2861_s18, %s2861_s18 }
  0x5b   : > { %p2864_p10 = pnand %p2862_p8, %p2826_p1 }
  0x5c   : > { %p2871_p3 = por %p2870_p2, %p2869_p12 }
  0x5d   : > { %p2865_p11 = pneg %p2864_p10 }
  0x5e   : > { %2552 = dma.hbm_to_vmem [thread:$0]  (!%p3256_p9), %s3637_s4, 2048, %s242_s28, [#allocation11], %s3050_s12, %s3050_s12, %s3051_s29  }
  0x5f   : > { %p2872_p7 = pnand %p2871_p3, %p2865_p11 }
  0x61   : > { %2875 = shalt.err (!%p2872_p7)
}
  0x62   : > { %s3052_s27 = smov 64   ;;  %s3053_s13 = smov 4  }
  0x63   : > { %s3638_s5 = sld [smem:[#allocation40_spill]]  ;;  %p2111_p13 = scmp.ge.s32.totalorder %s3044_s20, 2 }
  0x65   : > { %267 = sbr.rel (%p2111_p13) target bundleno = 157 (0x9d), region = 28 }
  0x69   : > { %2555 = dma.hbm_to_vmem [thread:$0]  (!%p3256_p9), %s3638_s5, 1024, %s255_s0, [#allocation14], %s3052_s27, %s3052_s27, %s3053_s13  }
  0x6a   : > { %s271_s18 = sand.u32 1, %s3032_s17   ;;  %s2298_s28 = sshll.u32 %s3040_s19, 5 }
  0x6b   : > { %s2112_s8 = sshll.u32 %s271_s18, 8  ;;  %s3054_s9 = smov 4096  }
  0x6c   : > { %s2528_s11 = scalar_select %p3192_p0, [#allocation5], [#allocation18] }
  0x6d   : > { %s2529_s13 = scalar_select %p3192_p0, %s3177_s24, 0 }
  0x6e   : > { %s2530_s15 = scalar_select %p3192_p0, [#allocation0], [#allocation19] }
  0x6f   : > { %s283_s0 = sld [smem:[%s2528_s11 + %s2529_s13]]  ;;  %s275_s12 = scalar_lea.vmem [#allocation7], %s2112_s8 }
  0x70   : > { %s305_s29 = sshll.u32 %s275_s12, 4  ;;  %s297_s26 = sld [smem:[%s2530_s15]]   ;;  %s306_s29 = int_to_ptr.vmem [resolvable:$true] %s305_s29 }
  0x71   : > { %2531 = sst [smem:[#allocation17]] (%p3192_p0), %s3054_s9  ;;  %s3055_s27 = smov 2048  }
  0x72   : > { %2532 = sst [smem:[#allocation17 + $0x1]] (%p3192_p0), %s3055_s27  ;;  %s3056_s4 = smov 16  }
  0x73   : > { %2533 = sst [smem:[#allocation17 + $0x2]] (%p3192_p0), %s3056_s4  ;;  %s3057_s5 = smov 128  }
  0x74   : > { %2534 = sst [smem:[#allocation17 + $0x3]] (%p3192_p0), %s3057_s5  ;;  %s3058_s6 = smov 8  }
  0x75   : > { %s2115_s19 = sshll.u32 %s283_s0, 1  ;;  %2535 = sst [smem:[#allocation17 + $0x4]] (%p3192_p0), %s3057_s5 }
  0x76   : > { %s290_s8 = sadd.s32 %s2298_s28, %s2115_s19  ;;  %s2118_s11 = sshll.u32 %s297_s26, 26 }
  0x77   : > { %s2117_s13 = sshll.u32 %s290_s8, 6  ;;  %s2119_s15 = sadd.s32 134217728, %s2118_s11 }
  0x78   : > { %s292_s9 = scalar_lea.hbm %s3588_s2, %s2117_s13  ;;  %2536 = sst [smem:[#allocation17 + $0x5]] (%p3192_p0), %s3058_s6 }
  0x79   : > { %s272_s27 = scalar_lea.sflag [#allocation8], %s271_s18  ;;  %s3059_s1 = smov 131072  }
  0x7a   : > { %2537 = dma.general (%p3192_p0), %s292_s9, 4096, %s306_s29, %s272_s27, %s3059_s1, [#allocation17], %s2119_s15, 0  }
  0x7b   : > { %s330_s4 = sand.u32 1, %s3020_s14   ;;  %s3673_s24 = smov (!%p3211_p6, %s3177_s24), 0 }
  0x7c   : > { %s2120_s5 = sshll.u32 %s330_s4, 7  ;;  %s328_s28 = sand.u32 1, %s3044_s20  }
  0x7d   : > { %s2538_s19 = scalar_select %p3211_p6, [#allocation5], [#allocation20] }
  0x7e   : > { %s332_s0 = scalar_lea.vmem [#allocation10], %s2120_s5  ;;  %s3321_s26 = scalar_lea.sflag [#allocation11], %s328_s28 }
  0x7f   : > { %s340_s17 = sld [smem:[%s2538_s19 + %s3673_s24]]  ;;  %s347_s6 = sshll.u32 %s332_s0, 4  ;;  %s3314_s6 = int_to_ptr.vmem [resolvable:$true] %s347_s6 }
  0x80   : > { %s2880_s13 = scalar_lea.hbm %s3589_s3, 2048 }
  0x85   : > { %s2299_s30 = sshll.u32 %s340_s17, 11 }
  0x86   : > { %s3319_s29 = scalar_lea.hbm %s3589_s3, %s2299_s30 }
  0x87   : > { %s2876_s8 = scalar_lea.hbm %s3319_s29, 2048  ;;  %p2881_p9 = scmp.lt.s32.totalorder %s3319_s29, %s3589_s3 }
  0x88   : > { %p2877_p0 = scmp.ne.s32.totalorder %s3319_s29, %s2876_s8  ;;  %p2882_p1 = scmp.lt.s32.totalorder %s2880_s13, %s2876_s8 }
  0x8a   : > { %p2878_p2 = pnand %p2877_p0, %p3211_p6  ;;  %p2883_p4 = por %p2882_p1, %p2881_p9 }
  0x8c   : > { %p2879_p12 = pneg %p2878_p2 }
  0x8e   : > { %p2884_p5 = pnand %p2883_p4, %p2879_p12 }
  0x90   : > { %2887 = shalt.err (!%p2884_p5)
}
  0x91   : > { %s2888_s9 = scalar_lea.vmem %s3314_s6, 2048  ;;  %s3060_s27 = smov [#allocation10]  }
  0x92   : > { %p2889_p8 = scmp.ne.s32.totalorder %s3314_s6, %s2888_s9  ;;  %s2892_s4 = sshll.u32 %s3060_s27, 4  ;;  %s2893_s4 = int_to_ptr.vmem [resolvable:$false] %s2892_s4 }
  0x93   : > { %s2894_s5 = scalar_lea.vmem %s2893_s4, 4096  ;;  %p2895_p3 = scmp.lt.s32.totalorder %s3314_s6, %s2893_s4 }
  0x94   : > { %p2890_p10 = pnand %p2889_p8, %p3211_p6  ;;  %p2896_p7 = scmp.lt.s32.totalorder %s2894_s5, %s2888_s9 }
  0x96   : > { %p2891_p11 = pneg %p2890_p10  ;;  %p2897_p0 = por %p2896_p7, %p2895_p3 }
  0x98   : > { %p2898_p2 = pnand %p2897_p0, %p2891_p11 }
  0x9a   : > { %2901 = shalt.err (!%p2898_p2)
}
  0x9b   : > { %s3061_s19 = smov 64   ;;  %s3062_s17 = smov 4  }
  0x9c   : > { %2540 = dma.hbm_to_vmem [thread:$0]  (%p3211_p6), %s3319_s29, 2048, %s3314_s6, %s3321_s26, %s3061_s19, %s3061_s19, %s3062_s17  }
  0x9d PF: > { %p3639_p12 = scmp.ne.s32.totalorder %s3634_s23, 0 }
  0x9e   : > { %s3640_s28 = sld [smem:[#allocation34_spill]] (!%p3639_p12)  ;;  %s361_s0 = sand.u32 (!%p3639_p12), 1, %s3028_s16  }
  0x9f   : > { %359 = sbr.rel (%p3639_p12) target bundleno = 950 (0x3b6), region = 40  ;;  %s2125_s30 = sshll.u32 (!%p3639_p12), %s361_s0, 8 }
  0xa0   : > { %s362_s1 = scalar_lea.sflag (!%p3639_p12), [#allocation8], %s361_s0  ;;  %s3347_s18 = scalar_lea.vmem (!%p3639_p12), [#allocation7], %s2125_s30 }
  0xa4   : > { %p3641_p9 = scmp.ne.s32.totalorder %s3640_s28, 0 }
  0xa6   : > { %2979 = dma.done.wait (%p3641_p9), %s362_s1, 4096  }
  0xa7   : > { %2981 = vsyncadd (%p3641_p9), %s362_s1, 4294963200  ;;  %s3642_s8 = sld [smem:[#allocation29_spill]]  ;;  %s370_s22 = sand.u32 1, %s3172_s21  }
  0xa8   : > { %s371_s23 = scalar_lea.sflag [#allocation11], %s370_s22  ;;  %p3643_p6 = scmp.ne.s32.totalorder %s3626_s7, 0 }
  0xad   : > { %s372_s6 = sand.u32 1, %s3642_s8  }
  0xae   : > { %s2126_s29 = sshll.u32 %s372_s6, 7 }
  0xaf   : > { %s3355_s26 = scalar_lea.vmem [#allocation10], %s2126_s29 }
  0xb0   : > { %2983 = dma.done.wait (%p3643_p6), %s371_s23, 2048  }
  0xb1   : > { %2985 = vsyncadd (%p3643_p6), %s371_s23, 4294965248  ;;  %p3644_p1 = scmp.eq.s32.totalorder %s3172_s21, 0 }
  0xb3   : > { %2987 = dma.done.wait (%p3644_p1), [#allocation11], 2048   ;;  %p3645_p4 = pmov %p3644_p1 }
  0xb4   : > { %p3646_p5 = pmov %p3644_p1 }
  0xb5   : > { %2989 = vsyncadd (%p3645_p4), [#allocation11], 4294965248 }
  0xb6   : > { %2991 = dma.done.wait (%p3646_p5), [#allocation14], 1024   ;;  %p3647_p8 = pmov %p3644_p1 }
  0xb7   : > { %s3648_s24 = sld [smem:[#allocation31_spill]]  ;;  %s411_s11 = sand.u32 1, %s3004_s10  }
  0xb8   : > { %2993 = vsyncadd (%p3647_p8), [#allocation14], 4294966272  ;;  %s2129_s7 = sshll.u32 %s411_s11, 6  ;;  %s3649_s9 = sld [smem:[#allocation41_spill]] }
  0xb9   : > { %s3376_s21 = scalar_lea.vmem [#allocation15], %s2129_s7 }
  0xbd   : > { %s435_s13 = sld [smem:[#allocation6 + %s3648_s24]] }
  0xbe   : > { %v2131_v0 = vld [vmem:[%s3649_s9] ss:$0 sm:$0xff] }
  0xbf   : > { %448 = vst [vmem:[#allocation2 + $0x30] sm:$0xff] %v2131_v0  ;;  %449 = vst [vmem:[#allocation2] sm:$0xff] %v2131_v0 }
  0xc0   : > { %450 = vst [vmem:[#allocation2 + $0x58] sm:$0xff] %v2131_v0  ;;  %451 = vst [vmem:[#allocation2 + $0x18] sm:$0xff] %v2131_v0 }
  0xc1   : > { %452 = vst [vmem:[#allocation2 + $0x50] sm:$0xff] %v2131_v0  ;;  %453 = vst [vmem:[#allocation2 + $0x68] sm:$0xff] %v2131_v0 }
  0xc2   : > { %454 = vst [vmem:[#allocation2 + $0x8] sm:$0xff] %v2131_v0  ;;  %455 = vst [vmem:[#allocation2 + $0x48] sm:$0xff] %v2131_v0 }
  0xc3   : > { %456 = vst [vmem:[#allocation2 + $0x40] sm:$0xff] %v2131_v0  ;;  %457 = vst [vmem:[#allocation2 + $0x20] sm:$0xff] %v2131_v0  ;;  %p2132_p10 = scmp.le.s32.totalorder %s435_s13, 0 }
  0xc4   : > { %458 = vst [vmem:[#allocation2 + $0x10] sm:$0xff] %v2131_v0  ;;  %459 = vst [vmem:[#allocation2 + $0x38] sm:$0xff] %v2131_v0 }
  0xc5   : > { %460 = vst [vmem:[#allocation2 + $0x60] sm:$0xff] %v2131_v0  ;;  %461 = vst [vmem:[#allocation2 + $0x70] sm:$0xff] %v2131_v0  ;;  %466 = sbr.rel (%p2132_p10) target bundleno = 920 (0x398), region = 64 }
  0xc6   : > { %462 = vst [vmem:[#allocation2 + $0x78] sm:$0xff] %v2131_v0  ;;  %463 = vst [vmem:[#allocation2 + $0x28] sm:$0xff] %v2131_v0 }
  0xca   : > { %v2680_v1 = vld [vmem:[#allocation12 + $0x74] ss:$8 sps:$4 sm:$0xff]   ;;  %v2682_v2 = vld [vmem:[#allocation12 + $0x70] ss:$8 sps:$4 sm:$0xff]   ;;  %v3063_v3 = vmov 0   ;;  %v2704_v18 = vld [vmem:[%s3355_s26] sm:$0xff]  }
  0xcb   : > { %723 = vmatprep.mubr.bf16.mxu0 %v3063_v3  ;;  %691 = vmatprep.subr.bf16.mxu0 %v2680_v1  ;;  %v2683_v4 = vld [vmem:[#allocation12 + $0x64] ss:$8 sps:$4 sm:$0xff]   ;;  %v2685_v5 = vld [vmem:[#allocation12 + $0x60] ss:$8 sps:$4 sm:$0xff]   ;;  %v2686_v6 = vld [vmem:[#allocation12 + $0x54] ss:$8 sps:$4 sm:$0xff]  }
  0xcc   : > { %692 = vmatpush1.bf16.msra.mxu0 %v2682_v2  ;;  %v2688_v7 = vld [vmem:[#allocation12 + $0x50] ss:$8 sps:$4 sm:$0xff]   ;;  %v2689_v8 = vld [vmem:[#allocation12 + $0x44] ss:$8 sps:$4 sm:$0xff]   ;;  %v2691_v9 = vld [vmem:[#allocation12 + $0x40] ss:$8 sps:$4 sm:$0xff]  }
  0xcd   : > { %693 = vmatprep.subr.bf16.mxu0 %v2683_v4  ;;  %v2692_v10 = vld [vmem:[#allocation12 + $0x34] ss:$8 sps:$4 sm:$0xff]   ;;  %v2694_v11 = vld [vmem:[#allocation12 + $0x30] ss:$8 sps:$4 sm:$0xff]   ;;  %v2695_v12 = vld [vmem:[#allocation12 + $0x24] ss:$8 sps:$4 sm:$0xff]  }
  0xce   : > { %v2697_v13 = vld [vmem:[#allocation12 + $0x20] ss:$8 sps:$4 sm:$0xff]   ;;  %v2698_v14 = vld [vmem:[#allocation12 + $0x14] ss:$8 sps:$4 sm:$0xff]   ;;  %v2700_v15 = vld [vmem:[#allocation12 + $0x10] ss:$8 sps:$4 sm:$0xff]  }
  0xcf   : > { %v2701_v16 = vld [vmem:[#allocation12 + $0x4] ss:$8 sps:$4 sm:$0xff]   ;;  %v2703_v17 = vld [vmem:[#allocation12] ss:$8 sps:$4 sm:$0xff]   ;;  %v2706_v20 = vld [vmem:[%s3355_s26 + $0x10] sm:$0xff]  }
  0xd0   : > { %694 = vmatpush1.bf16.msra.mxu0 %v2685_v5  ;;  %v2705_v19 = vld [vmem:[%s3355_s26 + $0x8] sm:$0xff]   ;;  %v2707_v21 = vld [vmem:[%s3355_s26 + $0x18] sm:$0xff]   ;;  %v2708_v22 = vld [vmem:[%s3355_s26 + $0x20] sm:$0xff]  }
  0xd1   : > { %695 = vmatprep.subr.bf16.mxu0 %v2686_v6  ;;  %v2709_v23 = vld [vmem:[%s3355_s26 + $0x28] sm:$0xff]   ;;  %v2710_v24 = vld [vmem:[%s3355_s26 + $0x30] sm:$0xff]   ;;  %v2711_v25 = vld [vmem:[%s3355_s26 + $0x38] sm:$0xff]  }
  0xd2   : > { %v2712_v26 = vld [vmem:[%s3355_s26 + $0x40] sm:$0xff]   ;;  %v2713_v27 = vld [vmem:[%s3355_s26 + $0x48] sm:$0xff]   ;;  %v2714_v28 = vld [vmem:[%s3355_s26 + $0x50] sm:$0xff]  }
  0xd3   : > { %v2715_v29 = vld [vmem:[%s3355_s26 + $0x58] sm:$0xff]   ;;  %v2716_v30 = vld [vmem:[%s3355_s26 + $0x60] sm:$0xff]   ;;  %v2717_v31 = vld [vmem:[%s3355_s26 + $0x68] sm:$0xff]  }
  0xd4   : > { %696 = vmatpush1.bf16.msra.mxu0 %v2688_v7  ;;  %v2718_v32 = vld [vmem:[%s3355_s26 + $0x70] sm:$0xff]   ;;  %v2719_v33 = vld [vmem:[%s3355_s26 + $0x78] sm:$0xff]   ;;  %v2739_v1 = vld [vmem:[%s3347_s18 + $0x4] ss:$8 sps:$4 sm:$0xff]  }
  0xd5   : > { %697 = vmatprep.subr.bf16.mxu0 %v2689_v8  ;;  %1380 = vmatprep.mubr.bf16.mxu1 %v2739_v1 }
  0xd8   : > { %698 = vmatpush1.bf16.msra.mxu0 %v2691_v9 }
  0xd9   : > { %699 = vmatprep.subr.bf16.mxu0 %v2692_v10 }
  0xdc   : > { %700 = vmatpush1.bf16.msra.mxu0 %v2694_v11 }
  0xdd   : > { %701 = vmatprep.subr.bf16.mxu0 %v2695_v12 }
  0xe0   : > { %702 = vmatpush1.bf16.msra.mxu0 %v2697_v13 }
  0xe1   : > { %703 = vmatprep.subr.bf16.mxu0 %v2698_v14 }
  0xe4   : > { %704 = vmatpush1.bf16.msra.mxu0 %v2700_v15 }
  0xe5   : > { %705 = vmatprep.subr.bf16.mxu0 %v2701_v16 }
  0xe8   : > { %706 = vmatpush1.bf16.msra.mxu0 %v2703_v17 }
  0xeb   : > { %724 = vmatmul.mubr.bf16.vlgmr.msra.gmra.mxu0 %v2704_v18 }
  0xec   : > { %733 = vmatprep.mubr.bf16.mxu0 %v3063_v3 }
  0xf3   : > { %734 = vmatmul.mubr.bf16.gmra.mxu0 %v2705_v19 }
  0xf4   : > { %743 = vmatprep.mubr.bf16.mxu0 %v3063_v3 }
  0xfb   : > { %744 = vmatmul.mubr.bf16.gmra.mxu0 %v2706_v20 }
  0xfc   : > { %753 = vmatprep.mubr.bf16.mxu0 %v3063_v3 }
 0x103   : > { %754 = vmatmul.mubr.bf16.gmra.mxu0 %v2707_v21 }
 0x104   : > { %763 = vmatprep.mubr.bf16.mxu0 %v3063_v3 }
 0x10b   : > { %764 = vmatmul.mubr.bf16.gmra.mxu0 %v2708_v22 }
 0x10c   : > { %773 = vmatprep.mubr.bf16.mxu0 %v3063_v3 }
 0x113   : > { %774 = vmatmul.mubr.bf16.gmra.mxu0 %v2709_v23 }
 0x114   : > { %783 = vmatprep.mubr.bf16.mxu0 %v3063_v3 }
 0x11b   : > { %784 = vmatmul.mubr.bf16.gmra.mxu0 %v2710_v24 }
 0x11c   : > { %793 = vmatprep.mubr.bf16.mxu0 %v3063_v3 }
 0x123   : > { %794 = vmatmul.mubr.bf16.gmra.mxu0 %v2711_v25 }
 0x124   : > { %803 = vmatprep.mubr.bf16.mxu0 %v3063_v3 }
 0x12b   : > { %804 = vmatmul.mubr.bf16.gmra.mxu0 %v2712_v26 }
 0x12c   : > { %813 = vmatprep.mubr.bf16.mxu0 %v3063_v3 }
 0x133   : > { %814 = vmatmul.mubr.bf16.gmra.mxu0 %v2713_v27 }
 0x134   : > { %823 = vmatprep.mubr.bf16.mxu0 %v3063_v3 }
 0x13b   : > { %824 = vmatmul.mubr.bf16.gmra.mxu0 %v2714_v28 }
 0x13c   : > { %833 = vmatprep.mubr.bf16.mxu0 %v3063_v3 }
 0x143   : > { %834 = vmatmul.mubr.bf16.gmra.mxu0 %v2715_v29 }
 0x144   : > { %843 = vmatprep.mubr.bf16.mxu0 %v3063_v3 }
 0x14b   : > { %844 = vmatmul.mubr.bf16.gmra.mxu0 %v2716_v30 }
 0x14c   : > { %853 = vmatprep.mubr.bf16.mxu0 %v3063_v3 }
 0x153   : > { %854 = vmatmul.mubr.bf16.gmra.mxu0 %v2717_v31 }
 0x154   : > { %863 = vmatprep.mubr.bf16.mxu0 %v3063_v3 }
 0x15b   : > { %864 = vmatmul.mubr.bf16.gmra.mxu0 %v2718_v32 }
 0x15c   : > { %873 = vmatprep.mubr.bf16.mxu0 %v3063_v3 }
 0x163   : > { %874 = vmatmul.mubr.bf16.gmra.mxu0 %v2719_v33 }
 0x1ab   : > { %v725_v34 = vpop.f32.mrf.mxu0 }
 0x1ad   : > { %v727_v35 = vpop.f32.mrf.mxu0 }
 0x1ae   : > { %v2300_v36 = vpack.c.bf16 %v727_v35, %v725_v34 }
 0x1af   : > { %v729_v37 = vpop.f32.mrf.mxu0 }
 0x1b0   : > { %1076 = vst [vmem:[#allocation3] sm:$0xff] %v2300_v36 }
 0x1b1   : > { %v731_v38 = vpop.f32.mrf.mxu0 }
 0x1b2   : > { %v2301_v39 = vpack.c.bf16 %v731_v38, %v729_v37 }
 0x1b3   : > { %v735_v40 = vpop.f32.mrf.mxu0 }
 0x1b4   : > { %1077 = vst [vmem:[#allocation3 + $0x8] sm:$0xff] %v2301_v39 }
 0x1b5   : > { %v737_v41 = vpop.f32.mrf.mxu0 }
 0x1b6   : > { %v2302_v42 = vpack.c.bf16 %v737_v41, %v735_v40 }
 0x1b7   : > { %v739_v43 = vpop.f32.mrf.mxu0 }
 0x1b8   : > { %1078 = vst [vmem:[#allocation3 + $0x10] sm:$0xff] %v2302_v42 }
 0x1b9   : > { %v741_v44 = vpop.f32.mrf.mxu0 }
 0x1ba   : > { %v2303_v45 = vpack.c.bf16 %v741_v44, %v739_v43 }
 0x1bb   : > { %v745_v46 = vpop.f32.mrf.mxu0 }
 0x1bc   : > { %1079 = vst [vmem:[#allocation3 + $0x18] sm:$0xff] %v2303_v45 }
 0x1bd   : > { %v747_v47 = vpop.f32.mrf.mxu0 }
 0x1be   : > { %v2304_v48 = vpack.c.bf16 %v747_v47, %v745_v46 }
 0x1bf   : > { %v749_v49 = vpop.f32.mrf.mxu0 }
 0x1c0   : > { %1080 = vst [vmem:[#allocation3 + $0x20] sm:$0xff] %v2304_v48 }
 0x1c1   : > { %v751_v50 = vpop.f32.mrf.mxu0 }
 0x1c2   : > { %v2305_v51 = vpack.c.bf16 %v751_v50, %v749_v49 }
 0x1c3   : > { %v755_v52 = vpop.f32.mrf.mxu0 }
 0x1c4   : > { %1081 = vst [vmem:[#allocation3 + $0x28] sm:$0xff] %v2305_v51 }
 0x1c5   : > { %v757_v53 = vpop.f32.mrf.mxu0 }
 0x1c6   : > { %v2306_v54 = vpack.c.bf16 %v757_v53, %v755_v52 }
 0x1c7   : > { %v759_v55 = vpop.f32.mrf.mxu0 }
 0x1c8   : > { %1082 = vst [vmem:[#allocation3 + $0x30] sm:$0xff] %v2306_v54 }
 0x1c9   : > { %v761_v56 = vpop.f32.mrf.mxu0 }
 0x1ca   : > { %v2307_v57 = vpack.c.bf16 %v761_v56, %v759_v55 }
 0x1cb   : > { %v765_v58 = vpop.f32.mrf.mxu0 }
 0x1cc   : > { %1083 = vst [vmem:[#allocation3 + $0x38] sm:$0xff] %v2307_v57 }
 0x1cd   : > { %v767_v59 = vpop.f32.mrf.mxu0 }
 0x1ce   : > { %v2308_v60 = vpack.c.bf16 %v767_v59, %v765_v58 }
 0x1cf   : > { %v769_v61 = vpop.f32.mrf.mxu0 }
 0x1d0   : > { %1084 = vst [vmem:[#allocation3 + $0x40] sm:$0xff] %v2308_v60 }
 0x1d1   : > { %v771_v62 = vpop.f32.mrf.mxu0 }
 0x1d2   : > { %v2309_v63 = vpack.c.bf16 %v771_v62, %v769_v61 }
 0x1d3   : > { %v775_v0 = vpop.f32.mrf.mxu0 }
 0x1d4   : > { %1085 = vst [vmem:[#allocation3 + $0x48] sm:$0xff] %v2309_v63 }
 0x1d5   : > { %v777_v2 = vpop.f32.mrf.mxu0 }
 0x1d6   : > { %v2310_v3 = vpack.c.bf16 %v777_v2, %v775_v0 }
 0x1d7   : > { %v779_v4 = vpop.f32.mrf.mxu0 }
 0x1d8   : > { %1086 = vst [vmem:[#allocation3 + $0x50] sm:$0xff] %v2310_v3 }
 0x1d9   : > { %v781_v5 = vpop.f32.mrf.mxu0 }
 0x1da   : > { %v2311_v6 = vpack.c.bf16 %v781_v5, %v779_v4 }
 0x1db   : > { %v785_v7 = vpop.f32.mrf.mxu0 }
 0x1dc   : > { %1087 = vst [vmem:[#allocation3 + $0x58] sm:$0xff] %v2311_v6 }
 0x1dd   : > { %v787_v8 = vpop.f32.mrf.mxu0 }
 0x1de   : > { %v2312_v9 = vpack.c.bf16 %v787_v8, %v785_v7 }
 0x1df   : > { %v789_v10 = vpop.f32.mrf.mxu0 }
 0x1e0   : > { %1088 = vst [vmem:[#allocation3 + $0x60] sm:$0xff] %v2312_v9 }
 0x1e1   : > { %v791_v11 = vpop.f32.mrf.mxu0 }
 0x1e2   : > { %v2313_v12 = vpack.c.bf16 %v791_v11, %v789_v10  ;;  %v2727_v10 = vld [vmem:[#allocation3 + $0x40] ss:$8 sps:$4 sm:$0xff]  }
 0x1e3   : > { %v795_v13 = vpop.f32.mrf.mxu0  ;;  %v2725_v8 = vld [vmem:[#allocation3 + $0x50] ss:$8 sps:$4 sm:$0xff]  }
 0x1e4   : > { %1089 = vst [vmem:[#allocation3 + $0x68] sm:$0xff] %v2313_v12  ;;  %v2729_v12 = vld [vmem:[#allocation3 + $0x30] ss:$8 sps:$4 sm:$0xff]  }
 0x1e5   : > { %v797_v14 = vpop.f32.mrf.mxu0 }
 0x1e6   : > { %v2314_v15 = vpack.c.bf16 %v797_v14, %v795_v13  ;;  %v2731_v14 = vld [vmem:[#allocation3 + $0x20] ss:$8 sps:$4 sm:$0xff]  }
 0x1e7   : > { %v799_v16 = vpop.f32.mrf.mxu0 }
 0x1e8   : > { %1090 = vst [vmem:[#allocation3 + $0x70] sm:$0xff] %v2314_v15 }
 0x1e9   : > { %v801_v17 = vpop.f32.mrf.mxu0 }
 0x1ea   : > { %v2315_v18 = vpack.c.bf16 %v801_v17, %v799_v16  ;;  %v2733_v16 = vld [vmem:[#allocation3 + $0x10] ss:$8 sps:$4 sm:$0xff]  }
 0x1eb   : > { %v805_v19 = vpop.f32.mrf.mxu0  ;;  %v2723_v6 = vld [vmem:[#allocation3 + $0x60] ss:$8 sps:$4 sm:$0xff]  }
 0x1ec   : > { %1091 = vst [vmem:[#allocation3 + $0x78] sm:$0xff] %v2315_v18  ;;  %v2735_v18 = vld [vmem:[#allocation3] ss:$8 sps:$4 sm:$0xff]  }
 0x1ed   : > { %v807_v20 = vpop.f32.mrf.mxu0 }
 0x1ee   : > { %v2316_v21 = vpack.c.bf16 %v807_v20, %v805_v19  ;;  %v2737_v20 = vld [vmem:[%s3347_s18] ss:$8 sps:$4 sm:$0xff]  }
 0x1ef   : > { %v809_v22 = vpop.f32.mrf.mxu0 }
 0x1f0   : > { %1092 = vst [vmem:[#allocation3 + $0x80] sm:$0xff] %v2316_v21  ;;  %v2744_v21 = vld [vmem:[%s3347_s18 + $0x14] ss:$8 sps:$4 sm:$0xff]  }
 0x1f1   : > { %v811_v23 = vpop.f32.mrf.mxu0 }
 0x1f2   : > { %v2317_v24 = vpack.c.bf16 %v811_v23, %v809_v22 }
 0x1f3   : > { %v815_v25 = vpop.f32.mrf.mxu0  ;;  %v2721_v4 = vld [vmem:[#allocation3 + $0x70] ss:$8 sps:$4 sm:$0xff]   ;;  %v2740_v22 = vld [vmem:[#allocation3 + $0x74] ss:$8 sps:$4 sm:$0xff]  }
 0x1f4   : > { %1093 = vst [vmem:[#allocation3 + $0x88] sm:$0xff] %v2317_v24  ;;  %v2742_v24 = vld [vmem:[#allocation3 + $0x64] ss:$8 sps:$4 sm:$0xff]  }
 0x1f5   : > { %v817_v26 = vpop.f32.mrf.mxu0 }
 0x1f6   : > { %v2318_v27 = vpack.c.bf16 %v817_v26, %v815_v25  ;;  %v2746_v26 = vld [vmem:[%s3347_s18 + $0x10] ss:$8 sps:$4 sm:$0xff]  }
 0x1f7   : > { %v819_v28 = vpop.f32.mrf.mxu0 }
 0x1f8   : > { %1094 = vst [vmem:[#allocation3 + $0x90] sm:$0xff] %v2318_v27  ;;  %v2751_v27 = vld [vmem:[%s3347_s18 + $0x24] ss:$8 sps:$4 sm:$0xff]  }
 0x1f9   : > { %v821_v29 = vpop.f32.mrf.mxu0 }
 0x1fa   : > { %v2319_v30 = vpack.c.bf16 %v821_v29, %v819_v28  ;;  %v2747_v28 = vld [vmem:[#allocation3 + $0x54] ss:$8 sps:$4 sm:$0xff]  }
 0x1fb   : > { %v825_v31 = vpop.f32.mrf.mxu0  ;;  %v2734_v17 = vld [vmem:[#allocation3 + $0x80] ss:$8 sps:$4 sm:$0xff]  }
 0x1fc   : > { %1095 = vst [vmem:[#allocation3 + $0x98] sm:$0xff] %v2319_v30  ;;  %v2749_v30 = vld [vmem:[#allocation3 + $0x44] ss:$8 sps:$4 sm:$0xff]  }
 0x1fd   : > { %v827_v32 = vpop.f32.mrf.mxu0 }
 0x1fe   : > { %v2320_v33 = vpack.c.bf16 %v827_v32, %v825_v31  ;;  %v2753_v32 = vld [vmem:[%s3347_s18 + $0x20] ss:$8 sps:$4 sm:$0xff]  }
 0x1ff   : > { %v829_v34 = vpop.f32.mrf.mxu0 }
 0x200   : > { %1096 = vst [vmem:[#allocation3 + $0xa0] sm:$0xff] %v2320_v33  ;;  %v2758_v33 = vld [vmem:[%s3347_s18 + $0x34] ss:$8 sps:$4 sm:$0xff]  }
 0x201   : > { %v831_v35 = vpop.f32.mrf.mxu0 }
 0x202   : > { %v2321_v36 = vpack.c.bf16 %v831_v35, %v829_v34  ;;  %v2754_v34 = vld [vmem:[#allocation3 + $0x34] ss:$8 sps:$4 sm:$0xff]  }
 0x203   : > { %v835_v37 = vpop.f32.mrf.mxu0  ;;  %v2732_v15 = vld [vmem:[#allocation3 + $0x90] ss:$8 sps:$4 sm:$0xff]  }
 0x204   : > { %1097 = vst [vmem:[#allocation3 + $0xa8] sm:$0xff] %v2321_v36  ;;  %v2756_v36 = vld [vmem:[#allocation3 + $0x24] ss:$8 sps:$4 sm:$0xff]  }
 0x205   : > { %v837_v38 = vpop.f32.mrf.mxu0 }
 0x206   : > { %v2322_v39 = vpack.c.bf16 %v837_v38, %v835_v37  ;;  %v2757_v37 = vld [vmem:[#allocation3 + $0x94] ss:$8 sps:$4 sm:$0xff]   ;;  %v2760_v38 = vld [vmem:[%s3347_s18 + $0x30] ss:$8 sps:$4 sm:$0xff]  }
 0x207   : > { %v839_v40 = vpop.f32.mrf.mxu0 }
 0x208   : > { %1098 = vst [vmem:[#allocation3 + $0xb0] sm:$0xff] %v2322_v39  ;;  %v2764_v39 = vld [vmem:[%s3347_s18 + $0x44] ss:$8 sps:$4 sm:$0xff]  }
 0x209   : > { %v841_v41 = vpop.f32.mrf.mxu0 }
 0x20a   : > { %v2323_v42 = vpack.c.bf16 %v841_v41, %v839_v40  ;;  %v2761_v40 = vld [vmem:[#allocation3 + $0x14] ss:$8 sps:$4 sm:$0xff]   ;;  %v2762_v41 = vld [vmem:[#allocation3 + $0x84] ss:$8 sps:$4 sm:$0xff]  }
 0x20b   : > { %v845_v43 = vpop.f32.mrf.mxu0  ;;  %v2730_v13 = vld [vmem:[#allocation3 + $0xa0] ss:$8 sps:$4 sm:$0xff]   ;;  %v2755_v35 = vld [vmem:[#allocation3 + $0xa4] ss:$8 sps:$4 sm:$0xff]  }
 0x20c   : > { %1099 = vst [vmem:[#allocation3 + $0xb8] sm:$0xff] %v2323_v42  ;;  %v2763_v42 = vld [vmem:[#allocation3 + $0x4] ss:$8 sps:$4 sm:$0xff]  }
 0x20d   : > { %v847_v44 = vpop.f32.mrf.mxu0 }
 0x20e   : > { %v2324_v45 = vpack.c.bf16 %v847_v44, %v845_v43  ;;  %v2766_v43 = vld [vmem:[%s3347_s18 + $0x40] ss:$8 sps:$4 sm:$0xff]   ;;  %v2767_v44 = vld [vmem:[%s3347_s18 + $0x54] ss:$8 sps:$4 sm:$0xff]  }
 0x20f   : > { %v849_v46 = vpop.f32.mrf.mxu0 }
 0x210   : > { %1100 = vst [vmem:[#allocation3 + $0xc0] sm:$0xff] %v2324_v45  ;;  %v2769_v45 = vld [vmem:[%s3347_s18 + $0x50] ss:$8 sps:$4 sm:$0xff]  }
 0x211   : > { %v851_v47 = vpop.f32.mrf.mxu0 }
 0x212   : > { %v2325_v48 = vpack.c.bf16 %v851_v47, %v849_v46  ;;  %v2770_v46 = vld [vmem:[%s3347_s18 + $0x64] ss:$8 sps:$4 sm:$0xff]   ;;  %v2772_v47 = vld [vmem:[%s3347_s18 + $0x60] ss:$8 sps:$4 sm:$0xff]  }
 0x213   : > { %v855_v49 = vpop.f32.mrf.mxu0  ;;  %v2728_v11 = vld [vmem:[#allocation3 + $0xb0] ss:$8 sps:$4 sm:$0xff]   ;;  %v2750_v31 = vld [vmem:[#allocation3 + $0xb4] ss:$8 sps:$4 sm:$0xff]  }
 0x214   : > { %1101 = vst [vmem:[#allocation3 + $0xc8] sm:$0xff] %v2325_v48  ;;  %v2773_v48 = vld [vmem:[%s3347_s18 + $0x74] ss:$8 sps:$4 sm:$0xff]  }
 0x215   : > { %v857_v50 = vpop.f32.mrf.mxu0 }
 0x216   : > { %v2326_v51 = vpack.c.bf16 %v857_v50, %v855_v49  ;;  %v2775_v49 = vld [vmem:[%s3347_s18 + $0x70] ss:$8 sps:$4 sm:$0xff]   ;;  %v2778_v50 = vld [vmem:[%s3347_s18 + $0x84] ss:$8 sps:$4 sm:$0xff]  }
 0x217   : > { %v859_v52 = vpop.f32.mrf.mxu0 }
 0x218   : > { %1102 = vst [vmem:[#allocation3 + $0xd0] sm:$0xff] %v2326_v51  ;;  %v2776_v51 = vld [vmem:[%s3347_s18 + $0x80] ss:$8 sps:$4 sm:$0xff]  }
 0x219   : > { %v861_v53 = vpop.f32.mrf.mxu0 }
 0x21a   : > { %v2327_v54 = vpack.c.bf16 %v861_v53, %v859_v52  ;;  %v2779_v52 = vld [vmem:[%s3347_s18 + $0x94] ss:$8 sps:$4 sm:$0xff]   ;;  %v2781_v53 = vld [vmem:[%s3347_s18 + $0x90] ss:$8 sps:$4 sm:$0xff]  }
 0x21b   : > { %v865_v55 = vpop.f32.mrf.mxu0  ;;  %v2726_v9 = vld [vmem:[#allocation3 + $0xc0] ss:$8 sps:$4 sm:$0xff]   ;;  %v2748_v29 = vld [vmem:[#allocation3 + $0xc4] ss:$8 sps:$4 sm:$0xff]  }
 0x21c   : > { %1103 = vst [vmem:[#allocation3 + $0xd8] sm:$0xff] %v2327_v54  ;;  %v2782_v54 = vld [vmem:[%s3347_s18 + $0xa4] ss:$8 sps:$4 sm:$0xff]  }
 0x21d   : > { %v867_v56 = vpop.f32.mrf.mxu0 }
 0x21e   : > { %v2328_v57 = vpack.c.bf16 %v867_v56, %v865_v55  ;;  %v2784_v55 = vld [vmem:[%s3347_s18 + $0xa0] ss:$8 sps:$4 sm:$0xff]   ;;  %v2785_v56 = vld [vmem:[%s3347_s18 + $0xb4] ss:$8 sps:$4 sm:$0xff]  }
 0x21f   : > { %v869_v58 = vpop.f32.mrf.mxu0 }
 0x220   : > { %1104 = vst [vmem:[#allocation3 + $0xe0] sm:$0xff] %v2328_v57  ;;  %v2787_v57 = vld [vmem:[%s3347_s18 + $0xb0] ss:$8 sps:$4 sm:$0xff]  }
 0x221   : > { %v871_v59 = vpop.f32.mrf.mxu0 }
 0x222   : > { %v2329_v60 = vpack.c.bf16 %v871_v59, %v869_v58  ;;  %v2788_v58 = vld [vmem:[%s3347_s18 + $0xc4] ss:$8 sps:$4 sm:$0xff]   ;;  %v2790_v59 = vld [vmem:[%s3347_s18 + $0xc0] ss:$8 sps:$4 sm:$0xff]  }
 0x223   : > { %v875_v61 = vpop.f32.mrf.mxu0  ;;  %v2724_v7 = vld [vmem:[#allocation3 + $0xd0] ss:$8 sps:$4 sm:$0xff]   ;;  %v2743_v25 = vld [vmem:[#allocation3 + $0xd4] ss:$8 sps:$4 sm:$0xff]  }
 0x224   : > { %1105 = vst [vmem:[#allocation3 + $0xe8] sm:$0xff] %v2329_v60  ;;  %v2791_v60 = vld [vmem:[%s3347_s18 + $0xd4] ss:$8 sps:$4 sm:$0xff]  }
 0x225   : > { %v877_v62 = vpop.f32.mrf.mxu0 }
 0x226   : > { %v2330_v63 = vpack.c.bf16 %v877_v62, %v875_v61  ;;  %v2793_v61 = vld [vmem:[%s3347_s18 + $0xd0] ss:$8 sps:$4 sm:$0xff]   ;;  %v2794_v62 = vld [vmem:[%s3347_s18 + $0xe4] ss:$8 sps:$4 sm:$0xff]  }
 0x227   : > { %v879_v0 = vpop.f32.mrf.mxu0 }
 0x228   : > { %1106 = vst [vmem:[#allocation3 + $0xf0] sm:$0xff] %v2330_v63  ;;  %v2796_v63 = vld [vmem:[%s3347_s18 + $0xe0] ss:$8 sps:$4 sm:$0xff]  }
 0x229   : > { %v881_v1 = vpop.f32.mrf.mxu0 }
 0x22a   : > { %v2331_v2 = vpack.c.bf16 %v881_v1, %v879_v0  ;;  %v2797_v0 = vld [vmem:[%s3347_s18 + $0xf4] ss:$8 sps:$4 sm:$0xff]   ;;  %v2799_v1 = vld [vmem:[%s3347_s18 + $0xf0] ss:$8 sps:$4 sm:$0xff]  }
 0x22b   : > { %v2722_v5 = vld [vmem:[#allocation3 + $0xe0] ss:$8 sps:$4 sm:$0xff]   ;;  %v2741_v23 = vld [vmem:[#allocation3 + $0xe4] ss:$8 sps:$4 sm:$0xff]  }
 0x22c   : > { %1107 = vst [vmem:[#allocation3 + $0xf8] sm:$0xff] %v2331_v2 }
 0x233   : > { %v2720_v3 = vld [vmem:[#allocation3 + $0xf0] ss:$8 sps:$4 sm:$0xff]   ;;  %v2736_v19 = vld [vmem:[#allocation3 + $0xf4] ss:$8 sps:$4 sm:$0xff]  }
 0x234   : > { %2396 = vmatprep.subr.bf16.mxu1 %v2720_v3 }
 0x235   : > { %2397 = vmatpush3.bf16.msra.mxu1 %v2721_v4 }
 0x236   : > { %2398 = vmatprep.subr.bf16.mxu1 %v2722_v5 }
 0x239   : > { %2399 = vmatpush3.bf16.msra.mxu1 %v2723_v6 }
 0x23a   : > { %2400 = vmatprep.subr.bf16.mxu1 %v2724_v7 }
 0x23d   : > { %2401 = vmatpush3.bf16.msra.mxu1 %v2725_v8 }
 0x23e   : > { %2402 = vmatprep.subr.bf16.mxu1 %v2726_v9 }
 0x241   : > { %2403 = vmatpush3.bf16.msra.mxu1 %v2727_v10 }
 0x242   : > { %2404 = vmatprep.subr.bf16.mxu1 %v2728_v11 }
 0x245   : > { %2405 = vmatpush3.bf16.msra.mxu1 %v2729_v12 }
 0x246   : > { %2406 = vmatprep.subr.bf16.mxu1 %v2730_v13 }
 0x249   : > { %2407 = vmatpush3.bf16.msra.mxu1 %v2731_v14 }
 0x24a   : > { %2408 = vmatprep.subr.bf16.mxu1 %v2732_v15 }
 0x24d   : > { %2409 = vmatpush3.bf16.msra.mxu1 %v2733_v16 }
 0x24e   : > { %2410 = vmatprep.subr.bf16.mxu1 %v2734_v17 }
 0x251   : > { %2411 = vmatpush3.bf16.msra.mxu1 %v2735_v18 }
 0x252   : > { %2460 = vmatprep.subr.bf16.mxu1 %v2736_v19 }
 0x254   : > { %1381 = vmatmul.mubr.bf16.vlgmr.msra.gmra.mxu1 %v2737_v20 }
 0x255   : > { %2461 = vmatpush3.bf16.msra.mxu1 %v2740_v22  ;;  %1388 = vmatprep.mubr.bf16.mxu1 %v2744_v21 }
 0x256   : > { %2462 = vmatprep.subr.bf16.mxu1 %v2741_v23 }
 0x259   : > { %2463 = vmatpush3.bf16.msra.mxu1 %v2742_v24 }
 0x25a   : > { %2464 = vmatprep.subr.bf16.mxu1 %v2743_v25 }
 0x25c   : > { %1389 = vmatmul.mubr.bf16.gmra.mxu1 %v2746_v26 }
 0x25d   : > { %2465 = vmatpush3.bf16.msra.mxu1 %v2747_v28  ;;  %1396 = vmatprep.mubr.bf16.mxu1 %v2751_v27 }
 0x25e   : > { %2466 = vmatprep.subr.bf16.mxu1 %v2748_v29 }
 0x261   : > { %2467 = vmatpush3.bf16.msra.mxu1 %v2749_v30 }
 0x262   : > { %2468 = vmatprep.subr.bf16.mxu1 %v2750_v31 }
 0x264   : > { %1397 = vmatmul.mubr.bf16.gmra.mxu1 %v2753_v32 }
 0x265   : > { %2469 = vmatpush3.bf16.msra.mxu1 %v2754_v34  ;;  %1404 = vmatprep.mubr.bf16.mxu1 %v2758_v33 }
 0x266   : > { %2470 = vmatprep.subr.bf16.mxu1 %v2755_v35  ;;  %v1108_v35 = vld [vmem:[#allocation2 + $0x30] sm:$0xff] }
 0x269   : > { %2471 = vmatpush3.bf16.msra.mxu1 %v2756_v36 }
 0x26a   : > { %2472 = vmatprep.subr.bf16.mxu1 %v2757_v37 }
 0x26c   : > { %1405 = vmatmul.mubr.bf16.gmra.mxu1 %v2760_v38 }
 0x26d   : > { %2473 = vmatpush3.bf16.msra.mxu1 %v2761_v40  ;;  %1412 = vmatprep.mubr.bf16.mxu1 %v2764_v39 }
 0x26e   : > { %2474 = vmatprep.subr.bf16.mxu1 %v2762_v41  ;;  %v1109_v41 = vld [vmem:[#allocation2] sm:$0xff] }
 0x271   : > { %2475 = vmatpush3.bf16.msra.mxu1 %v2763_v42 }
 0x274   : > { %1413 = vmatmul.mubr.bf16.gmra.mxu1 %v2766_v43 }
 0x275   : > { %1420 = vmatprep.mubr.bf16.mxu1 %v2767_v44 }
 0x27c   : > { %1421 = vmatmul.mubr.bf16.gmra.mxu1 %v2769_v45 }
 0x27d   : > { %1428 = vmatprep.mubr.bf16.mxu1 %v2770_v46 }
 0x284   : > { %1429 = vmatmul.mubr.bf16.gmra.mxu1 %v2772_v47 }
 0x285   : > { %1436 = vmatprep.mubr.bf16.mxu1 %v2773_v48  ;;  %v1110_v48 = vld [vmem:[#allocation2 + $0x58] sm:$0xff] }
 0x28c   : > { %1437 = vmatmul.mubr.bf16.gmra.mxu1 %v2775_v49 }
 0x28d   : > { %1750 = vmatprep.mubr.bf16.mxu1 %v2778_v50 }
 0x294   : > { %1751 = vmatmul.mubr.bf16.vlgmr.msra.gmra.mxu1 %v2776_v51 }
 0x295   : > { %1758 = vmatprep.mubr.bf16.mxu1 %v2779_v52 }
 0x29c   : > { %1759 = vmatmul.mubr.bf16.gmra.mxu1 %v2781_v53 }
 0x29d   : > { %1766 = vmatprep.mubr.bf16.mxu1 %v2782_v54 }
 0x2a4   : > { %1767 = vmatmul.mubr.bf16.gmra.mxu1 %v2784_v55  ;;  %v1111_v55 = vld [vmem:[#allocation2 + $0x18] sm:$0xff] }
 0x2a5   : > { %1774 = vmatprep.mubr.bf16.mxu1 %v2785_v56 }
 0x2ac   : > { %1775 = vmatmul.mubr.bf16.gmra.mxu1 %v2787_v57 }
 0x2ad   : > { %1782 = vmatprep.mubr.bf16.mxu1 %v2788_v58 }
 0x2b4   : > { %1783 = vmatmul.mubr.bf16.gmra.mxu1 %v2790_v59 }
 0x2b5   : > { %1790 = vmatprep.mubr.bf16.mxu1 %v2791_v60 }
 0x2bc   : > { %1791 = vmatmul.mubr.bf16.gmra.mxu1 %v2793_v61 }
 0x2bd   : > { %1798 = vmatprep.mubr.bf16.mxu1 %v2794_v62  ;;  %v1112_v62 = vld [vmem:[#allocation2 + $0x50] sm:$0xff] }
 0x2c4   : > { %1799 = vmatmul.mubr.bf16.gmra.mxu1 %v2796_v63 }
 0x2c5   : > { %1806 = vmatprep.mubr.bf16.mxu1 %v2797_v0 }
 0x2cc   : > { %1807 = vmatmul.mubr.bf16.gmra.mxu1 %v2799_v1 }
 0x314   : > { %v2412_v2 = vpop.f32.mrf.mxu1 }
 0x316   : > { %v2413_v3 = vpop.f32.mrf.mxu1 }
 0x317   : > { %v2414_v34 = vadd.f32 %v2413_v3, %v2412_v2 }
 0x318   : > { %v2415_v4 = vpop.f32.mrf.mxu1 }
 0x319   : > { %v1445_v38 = vadd.f32 %v2414_v34, %v1108_v35 }
 0x31a   : > { %v2416_v5 = vpop.f32.mrf.mxu1 }
 0x31b   : > { %v2417_v39 = vadd.f32 %v2416_v5, %v2415_v4  ;;  %v1113_v5 = vld [vmem:[#allocation2 + $0x68] sm:$0xff] }
 0x31c   : > { %v2418_v6 = vpop.f32.mrf.mxu1 }
 0x31d   : > { %v1446_v45 = vadd.f32 %v2417_v39, %v1109_v41  ;;  %v1115_v39 = vld [vmem:[#allocation2 + $0x48] sm:$0xff] }
 0x31e   : > { %v2419_v7 = vpop.f32.mrf.mxu1 }
 0x31f   : > { %v2420_v46 = vadd.f32 %v2419_v7, %v2418_v6 }
 0x320   : > { %v2421_v8 = vpop.f32.mrf.mxu1 }
 0x321   : > { %v1447_v52 = vadd.f32 %v2420_v46, %v1110_v48 }
 0x322   : > { %v2422_v9 = vpop.f32.mrf.mxu1 }
 0x323   : > { %v2423_v53 = vadd.f32 %v2422_v9, %v2421_v8 }
 0x324   : > { %v2424_v10 = vpop.f32.mrf.mxu1 }
 0x325   : > { %v1448_v59 = vadd.f32 %v2423_v53, %v1111_v55 }
 0x326   : > { %v2425_v11 = vpop.f32.mrf.mxu1 }
 0x327   : > { %v2426_v60 = vadd.f32 %v2425_v11, %v2424_v10  ;;  %v1114_v11 = vld [vmem:[#allocation2 + $0x8] sm:$0xff] }
 0x328   : > { %v2427_v12 = vpop.f32.mrf.mxu1 }
 0x329   : > { %v1449_v2 = vadd.f32 %v2426_v60, %v1112_v62 }
 0x32a   : > { %v2428_v13 = vpop.f32.mrf.mxu1 }
 0x32b   : > { %v2429_v3 = vadd.f32 %v2428_v13, %v2427_v12 }
 0x32c   : > { %v3442_v14 = vpop.f32.mrf.mxu1 }
 0x32d   : > { %v1450_v9 = vadd.f32 %v2429_v3, %v1113_v5  ;;  %v1121_v5 = vld [vmem:[#allocation2 + $0x70] sm:$0xff] }
 0x32e   : > { %v3444_v15 = vpop.f32.mrf.mxu1 }
 0x32f   : > { %v2432_v34 = vadd.f32 %v3444_v15, %v3442_v14 }
 0x330   : > { %v3446_v16 = vpop.f32.mrf.mxu1 }
 0x332   : > { %v3448_v17 = vpop.f32.mrf.mxu1 }
 0x333   : > { %v2435_v12 = vadd.f32 %v3448_v17, %v3446_v16 }
 0x334   : > { %v3450_v18 = vpop.f32.mrf.mxu1 }
 0x336   : > { %v3452_v19 = vpop.f32.mrf.mxu1 }
 0x337   : > { %v2438_v14 = vadd.f32 %v3452_v19, %v3450_v18 }
 0x338   : > { %v3454_v20 = vpop.f32.mrf.mxu1 }
 0x33a   : > { %v3456_v21 = vpop.f32.mrf.mxu1 }
 0x33b   : > { %v2441_v16 = vadd.f32 %v3456_v21, %v3454_v20 }
 0x33c   : > { %v3458_v22 = vpop.f32.mrf.mxu1 }
 0x33e   : > { %v3460_v23 = vpop.f32.mrf.mxu1 }
 0x33f   : > { %v2444_v18 = vadd.f32 %v3460_v23, %v3458_v22 }
 0x340   : > { %v3462_v24 = vpop.f32.mrf.mxu1 }
 0x342   : > { %v3464_v25 = vpop.f32.mrf.mxu1 }
 0x343   : > { %v2447_v20 = vadd.f32 %v3464_v25, %v3462_v24 }
 0x344   : > { %v3466_v26 = vpop.f32.mrf.mxu1 }
 0x346   : > { %v3468_v27 = vpop.f32.mrf.mxu1 }
 0x347   : > { %v2450_v22 = vadd.f32 %v3468_v27, %v3466_v26 }
 0x348   : > { %v3470_v28 = vpop.f32.mrf.mxu1 }
 0x34a   : > { %v3472_v29 = vpop.f32.mrf.mxu1 }
 0x34b   : > { %v2453_v24 = vadd.f32 %v3472_v29, %v3470_v28 }
 0x34c   : > { %v3474_v30 = vpop.f32.mrf.mxu1 }
 0x34e   : > { %v3476_v31 = vpop.f32.mrf.mxu1 }
 0x34f   : > { %v2456_v26 = vadd.f32 %v3476_v31, %v3474_v30 }
 0x350   : > { %v3478_v32 = vpop.f32.mrf.mxu1 }
 0x352   : > { %v3480_v33 = vpop.f32.mrf.mxu1 }
 0x353   : > { %v2459_v28 = vadd.f32 %v3480_v33, %v3478_v32 }
 0x354   : > { %v2476_v36 = vpop.f32.mrf.mxu1 }
 0x356   : > { %v2477_v37 = vpop.f32.mrf.mxu1 }
 0x357   : > { %v2478_v40 = vadd.f32 %v2477_v37, %v2476_v36 }
 0x358   : > { %v2479_v42 = vpop.f32.mrf.mxu1 }
 0x359   : > { %v1815_v43 = vadd.f32 %v2478_v40, %v1445_v38  ;;  %v1451_v38 = vadd.f32 %v2432_v34, %v1114_v11  ;;  %v1122_v34 = vld [vmem:[#allocation2 + $0x78] sm:$0xff] }
 0x35a   : > { %v2480_v44 = vpop.f32.mrf.mxu1 }
 0x35b   : > { %1831 = vst [vmem:[#allocation2 + $0x30] sm:$0xff] %v1815_v43  ;;  %v2481_v47 = vadd.f32 %v2480_v44, %v2479_v42  ;;  %v1452_v43 = vadd.f32 %v2435_v12, %v1115_v39  ;;  %v1116_v44 = vld [vmem:[#allocation2 + $0x40] sm:$0xff] }
 0x35c   : > { %v2482_v49 = vpop.f32.mrf.mxu1  ;;  %v1453_v48 = vadd.f32 %v2438_v14, %v1116_v44 }
 0x35d   : > { %v1816_v50 = vadd.f32 %v2481_v47, %v1446_v45 }
 0x35e   : > { %v2483_v51 = vpop.f32.mrf.mxu1 }
 0x35f   : > { %1832 = vst [vmem:[#allocation2] sm:$0xff] %v1816_v50  ;;  %v2484_v54 = vadd.f32 %v2483_v51, %v2482_v49  ;;  %v1117_v49 = vld [vmem:[#allocation2 + $0x20] sm:$0xff] }
 0x360   : > { %v2485_v56 = vpop.f32.mrf.mxu1  ;;  %v1454_v53 = vadd.f32 %v2441_v16, %v1117_v49 }
 0x361   : > { %v1817_v57 = vadd.f32 %v2484_v54, %v1447_v52  ;;  %v1118_v54 = vld [vmem:[#allocation2 + $0x10] sm:$0xff] }
 0x362   : > { %v2486_v58 = vpop.f32.mrf.mxu1 }
 0x363   : > { %1833 = vst [vmem:[#allocation2 + $0x58] sm:$0xff] %v1817_v57  ;;  %v2487_v61 = vadd.f32 %v2486_v58, %v2485_v56  ;;  %v1455_v58 = vadd.f32 %v2444_v18, %v1118_v54 }
 0x364   : > { %v2488_v63 = vpop.f32.mrf.mxu1 }
 0x365   : > { %v1818_v0 = vadd.f32 %v2487_v61, %v1448_v59  ;;  %v1119_v59 = vld [vmem:[#allocation2 + $0x38] sm:$0xff] }
 0x366   : > { %v2489_v1 = vpop.f32.mrf.mxu1 }
 0x367   : > { %1834 = vst [vmem:[#allocation2 + $0x18] sm:$0xff] %v1818_v0  ;;  %v2490_v4 = vadd.f32 %v2489_v1, %v2488_v63  ;;  %v1456_v63 = vadd.f32 %v2447_v20, %v1119_v59  ;;  %v1120_v0 = vld [vmem:[#allocation2 + $0x60] sm:$0xff] }
 0x368   : > { %v2491_v6 = vpop.f32.mrf.mxu1 }
 0x369   : > { %v1819_v7 = vadd.f32 %v2490_v4, %v1449_v2  ;;  %v1457_v4 = vadd.f32 %v2450_v22, %v1120_v0 }
 0x36a   : > { %v2492_v8 = vpop.f32.mrf.mxu1 }
 0x36b   : > { %1835 = vst [vmem:[#allocation2 + $0x50] sm:$0xff] %v1819_v7  ;;  %v2493_v10 = vadd.f32 %v2492_v8, %v2491_v6 }
 0x36c   : > { %v2494_v35 = vpop.f32.mrf.mxu1 }
 0x36d   : > { %v1820_v36 = vadd.f32 %v2493_v10, %v1450_v9  ;;  %v1458_v9 = vadd.f32 %v2453_v24, %v1121_v5 }
 0x36e   : > { %v2495_v37 = vpop.f32.mrf.mxu1 }
 0x36f   : > { %1836 = vst [vmem:[#allocation2 + $0x68] sm:$0xff] %v1820_v36  ;;  %v2496_v13 = vadd.f32 %v2495_v37, %v2494_v35  ;;  %v1459_v36 = vadd.f32 %v2456_v26, %v1122_v34  ;;  %v1123_v37 = vld [vmem:[#allocation2 + $0x28] sm:$0xff] }
 0x370   : > { %v2497_v40 = vpop.f32.mrf.mxu1  ;;  %v1460_v39 = vadd.f32 %v2459_v28, %v1123_v37 }
 0x371   : > { %v1821_v41 = vadd.f32 %v2496_v13, %v1451_v38 }
 0x372   : > { %v2498_v42 = vpop.f32.mrf.mxu1 }
 0x373   : > { %1837 = vst [vmem:[#allocation2 + $0x8] sm:$0xff] %v1821_v41  ;;  %v2499_v15 = vadd.f32 %v2498_v42, %v2497_v40 }
 0x374   : > { %v2500_v45 = vpop.f32.mrf.mxu1 }
 0x375   : > { %v1822_v46 = vadd.f32 %v2499_v15, %v1452_v43 }
 0x376   : > { %v2501_v47 = vpop.f32.mrf.mxu1 }
 0x377   : > { %1838 = vst [vmem:[#allocation2 + $0x48] sm:$0xff] %v1822_v46  ;;  %v2502_v17 = vadd.f32 %v2501_v47, %v2500_v45 }
 0x378   : > { %v2503_v50 = vpop.f32.mrf.mxu1 }
 0x379   : > { %v1823_v51 = vadd.f32 %v2502_v17, %v1453_v48 }
 0x37a   : > { %v2504_v52 = vpop.f32.mrf.mxu1 }
 0x37b   : > { %1839 = vst [vmem:[#allocation2 + $0x40] sm:$0xff] %v1823_v51  ;;  %v2505_v19 = vadd.f32 %v2504_v52, %v2503_v50 }
 0x37c   : > { %v2506_v55 = vpop.f32.mrf.mxu1 }
 0x37d   : > { %v1824_v56 = vadd.f32 %v2505_v19, %v1454_v53 }
 0x37e   : > { %v2507_v57 = vpop.f32.mrf.mxu1 }
 0x37f   : > { %1840 = vst [vmem:[#allocation2 + $0x20] sm:$0xff] %v1824_v56  ;;  %v2508_v21 = vadd.f32 %v2507_v57, %v2506_v55 }
 0x380   : > { %v2509_v60 = vpop.f32.mrf.mxu1 }
 0x381   : > { %v1825_v61 = vadd.f32 %v2508_v21, %v1455_v58 }
 0x382   : > { %v2510_v62 = vpop.f32.mrf.mxu1 }
 0x383   : > { %1841 = vst [vmem:[#allocation2 + $0x10] sm:$0xff] %v1825_v61  ;;  %v2511_v23 = vadd.f32 %v2510_v62, %v2509_v60 }
 0x384   : > { %v2512_v1 = vpop.f32.mrf.mxu1 }
 0x385   : > { %v1826_v2 = vadd.f32 %v2511_v23, %v1456_v63 }
 0x386   : > { %v2513_v3 = vpop.f32.mrf.mxu1 }
 0x387   : > { %1842 = vst [vmem:[#allocation2 + $0x38] sm:$0xff] %v1826_v2  ;;  %v2514_v25 = vadd.f32 %v2513_v3, %v2512_v1 }
 0x388   : > { %v2515_v6 = vpop.f32.mrf.mxu1 }
 0x389   : > { %v1827_v7 = vadd.f32 %v2514_v25, %v1457_v4 }
 0x38a   : > { %v2516_v8 = vpop.f32.mrf.mxu1 }
 0x38b   : > { %1843 = vst [vmem:[#allocation2 + $0x60] sm:$0xff] %v1827_v7  ;;  %v2517_v27 = vadd.f32 %v2516_v8, %v2515_v6 }
 0x38c   : > { %v2518_v10 = vpop.f32.mrf.mxu1 }
 0x38d   : > { %v1828_v11 = vadd.f32 %v2517_v27, %v1458_v9 }
 0x38e   : > { %v2519_v35 = vpop.f32.mrf.mxu1 }
 0x38f   : > { %1844 = vst [vmem:[#allocation2 + $0x70] sm:$0xff] %v1828_v11  ;;  %v2520_v29 = vadd.f32 %v2519_v35, %v2518_v10 }
 0x390   : > { %v2521_v38 = vpop.f32.mrf.mxu1 }
 0x391   : > { %v1829_v12 = vadd.f32 %v2520_v29, %v1459_v36 }
 0x392   : > { %v2522_v13 = vpop.f32.mrf.mxu1 }
 0x393   : > { %1845 = vst [vmem:[#allocation2 + $0x78] sm:$0xff] %v1829_v12  ;;  %v2523_v40 = vadd.f32 %v2522_v13, %v2521_v38 }
 0x395   : > { %v1830_v30 = vadd.f32 %v2523_v40, %v1460_v39 }
 0x397   : > { %1846 = vst [vmem:[#allocation2 + $0x28] sm:$0xff] %v1830_v30 }
 0x398 PF: > { %v1850_v31 = vld [vmem:[#allocation2 + $0x30] sm:$0xff]  ;;  %s3650_s27 = sld [smem:[#allocation31_spill]]  ;;  %v1851_v41 = vld [vmem:[#allocation2] sm:$0xff]  ;;  %v1852_v42 = vld [vmem:[#allocation2 + $0x58] sm:$0xff]  ;;  %s1976_s5 = sshll.u32 %s3376_s21, 4  ;;  %s3515_s5 = int_to_ptr.vmem [resolvable:$true] %s1976_s5 }
 0x399   : > { %v1866_v43 = vmax.f32 %v1850_v31, 0.0  ;;  %v1867_v14 = vmax.f32 %v1851_v41, 0.0  ;;  %v1853_v32 = vld [vmem:[#allocation2 + $0x18] sm:$0xff]  ;;  %v1868_v33 = vmax.f32 %v1852_v42, 0.0  ;;  %v1854_v15 = vld [vmem:[#allocation2 + $0x50] sm:$0xff]  ;;  %v1855_v44 = vld [vmem:[#allocation2 + $0x68] sm:$0xff] }
 0x39a   : > { %v1869_v45 = vmax.f32 %v1853_v32, 0.0  ;;  %v1870_v46 = vmax.f32 %v1854_v15, 0.0  ;;  %v1871_v47 = vmax.f32 %v1855_v44, 0.0  ;;  %v1856_v48 = vld [vmem:[#allocation2 + $0x8] sm:$0xff]  ;;  %v1858_v17 = vld [vmem:[#allocation2 + $0x40] sm:$0xff]  ;;  %v1860_v18 = vld [vmem:[#allocation2 + $0x10] sm:$0xff] }
 0x39b   : > { %v1857_v16 = vld [vmem:[#allocation2 + $0x48] sm:$0xff]  ;;  %v2352_v49 = vpack.c.bf16 %v1867_v14, %v1866_v43  ;;  %v1872_v50 = vmax.f32 %v1856_v48, 0.0  ;;  %v1859_v52 = vld [vmem:[#allocation2 + $0x20] sm:$0xff]  ;;  %v1874_v53 = vmax.f32 %v1858_v17, 0.0  ;;  %v1861_v19 = vld [vmem:[#allocation2 + $0x38] sm:$0xff]  ;;  %v1876_v57 = vmax.f32 %v1860_v18, 0.0 }
 0x39c   : > { %v1873_v51 = vmax.f32 %v1857_v16, 0.0  ;;  %v2357_v54 = vpack.c.bf16 %v1869_v45, %v1868_v33  ;;  %v2362_v55 = vpack.c.bf16 %v1871_v47, %v1870_v46  ;;  %v1875_v56 = vmax.f32 %v1859_v52, 0.0  ;;  %v1862_v58 = vld [vmem:[#allocation2 + $0x60] sm:$0xff]  ;;  %v1863_v20 = vld [vmem:[#allocation2 + $0x70] sm:$0xff]  ;;  %v1864_v21 = vld [vmem:[#allocation2 + $0x78] sm:$0xff]  ;;  %s3651_s28 = sld [smem:[#allocation42_spill]] }
 0x39d   : > { %2353 = vst [vmem:[%s3376_s21] sm:$0xff] %v2352_v49   ;;  %v1877_v60 = vmax.f32 %v1861_v19, 0.0  ;;  %v1878_v61 = vmax.f32 %v1862_v58, 0.0  ;;  %v1879_v62 = vmax.f32 %v1863_v20, 0.0  ;;  %v1880_v23 = vmax.f32 %v1864_v21, 0.0  ;;  %s3523_s30 = scalar_lea.sflag [#allocation9], %s411_s11  ;;  %s2902_s1 = scalar_lea.vmem %s3515_s5, 1024 }
 0x39e   : > { %s2348_s4 = sshll.u32 %s3650_s27, 10  ;;  %v2367_v59 = vpack.c.bf16 %v1873_v51, %v1872_v50  ;;  %v1865_v63 = vld [vmem:[#allocation2 + $0x28] sm:$0xff]  ;;  %2389 = vst [vmem:[%s3376_s21 + $0x8] sm:$0xff] %v2357_v54   ;;  %2390 = vst [vmem:[%s3376_s21 + $0x10] sm:$0xff] %v2362_v55   ;;  %v2372_v22 = vpack.c.bf16 %v1875_v56, %v1874_v53  ;;  %p2903_p11 = scmp.ne.s32.totalorder %s3515_s5, %s2902_s1 }
 0x39f   : > { %v1881_v0 = vmax.f32 %v1865_v63, 0.0  ;;  %v2377_v1 = vpack.c.bf16 %v1877_v60, %v1876_v57  ;;  %v2382_v2 = vpack.c.bf16 %v1879_v62, %v1878_v61  ;;  %p3652_p3 = scmp.ne.s32.totalorder %s3630_s25, 0  ;;  %s3064_s18 = smov [#allocation15]  }
 0x3a0   : > { %2391 = vst [vmem:[%s3376_s21 + $0x18] sm:$0xff] %v2367_v59   ;;  %2392 = vst [vmem:[%s3376_s21 + $0x20] sm:$0xff] %v2372_v22   ;;  %s2906_s8 = sshll.u32 %s3064_s18, 4  ;;  %s2907_s8 = int_to_ptr.vmem [resolvable:$false] %s2906_s8 }
 0x3a1   : > { %v2387_v3 = vpack.c.bf16 %v1881_v0, %v1880_v23  ;;  %2393 = vst [vmem:[%s3376_s21 + $0x28] sm:$0xff] %v2377_v1   ;;  %2394 = vst [vmem:[%s3376_s21 + $0x30] sm:$0xff] %v2382_v2   ;;  %p2904_p7 = pnand %p2903_p11, %p3652_p3  ;;  %s2908_s22 = scalar_lea.vmem %s2907_s8, 2048 }
 0x3a2   : > { %s3513_s0 = scalar_lea.hbm %s3651_s28, %s2348_s4  ;;  %p2909_p2 = scmp.lt.s32.totalorder %s3515_s5, %s2907_s8 }
 0x3a3   : > { %2395 = vst [vmem:[%s3376_s21 + $0x38] sm:$0xff] %v2387_v3   ;;  %p2905_p0 = pneg %p2904_p7  ;;  %p2910_p12 = scmp.lt.s32.totalorder %s2908_s22, %s2902_s1 }
 0x3a5   : > { %p2911_p9 = por %p2910_p12, %p2909_p2 }
 0x3a7   : > { %p2912_p6 = pnand %p2911_p9, %p2905_p0 }
 0x3a9   : > { %2915 = shalt.err (!%p2912_p6)
}
 0x3aa   : > { %s2916_s6 = scalar_lea.hbm %s3513_s0, 1024  ;;  %s2920_s26 = scalar_lea.hbm %s3651_s28, 2048 }
 0x3ab   : > { %p2917_p1 = scmp.ne.s32.totalorder %s3513_s0, %s2916_s6  ;;  %p2921_p8 = scmp.lt.s32.totalorder %s3513_s0, %s3651_s28 }
 0x3ac   : > { %p2922_p10 = scmp.lt.s32.totalorder %s2920_s26, %s2916_s6 }
 0x3ad   : > { %p2918_p4 = pnand %p2917_p1, %p3652_p3 }
 0x3ae   : > { %p2923_p11 = por %p2922_p10, %p2921_p8 }
 0x3af   : > { %p2919_p5 = pneg %p2918_p4 }
 0x3b1   : > { %p2924_p7 = pnand %p2923_p11, %p2919_p5 }
 0x3b3   : > { %2927 = shalt.err (!%p2924_p7)
}
 0x3b4   : > { %s3065_s13 = smov 64   ;;  %s3066_s7 = smov 4  }
 0x3b5   : > { %2547 = dma.vmem_to_hbm [thread:$0]  (%p3652_p3), %s3515_s5, 1024, %s3513_s0, %s3523_s30, %s3065_s13, %s3065_s13, %s3066_s7  }
 0x3b6 PF: > { %s3653_s15 = sld [smem:[#allocation27_spill]] }
 0x3b7   : > { %s3654_s12 = sld [smem:[#allocation38_spill]] }
 0x3bc   : > { %s1991_s9 = sand.u32 1, %s3653_s15  }
 0x3bd   : > { %p3655_p0 = scmp.ne.s32.totalorder %s3654_s12, 0  ;;  %s1992_s21 = scalar_lea.sflag [#allocation9], %s1991_s9 }
 0x3bf   : > { %p2557_p2 = pnand %p2111_p13, %p3655_p0 }
 0x3c1   : > { %p2558_p12 = pneg %p2557_p2 }
 0x3c3   : > { %2995 = dma.done.wait (%p2558_p12), %s1992_s21, 1024  }
 0x3c4   : > { %2997 = vsyncadd (%p2558_p12), %s1992_s21, 4294966272  ;;  %s37_s20 = sadd.s32 1, %s3044_s20   ;;  %s3656_s27 = sld [smem:[#allocation28_spill]] }
 0x3c5   : > { %p34_p9 = scmp.ge.s32.totalorder %s37_s20, 4   ;;  %s3657_s11 = sld [smem:[#allocation37_spill]] }
 0x3c6   : > { %s3658_s12 = sld [smem:[#allocation29_spill]]  ;;  %s3664_s1 = smov %s3004_s10 }
 0x3c7   : > { %s3659_s25 = sld [smem:[#allocation36_spill]]  ;;  %s3666_s13 = smov %s3020_s14 }
 0x3c8   : > { %s3660_s4 = sld [smem:[#allocation30_spill]]  ;;  %s3668_s15 = smov %s3028_s16 }
 0x3c9   : > { %s3661_s17 = sld [smem:[#allocation35_spill]] }
 0x3ca   : > { %s3662_s18 = sld [smem:[#allocation32_spill]]  ;;  %s3665_s10 = smov %s3656_s27 }
 0x3cb   : > { %s3663_s19 = sld [smem:[#allocation33_spill]]  ;;  %36 = sbr.rel (!%p34_p9) target bundleno = 39 (0x27), region = 124 }
 0x3cd   : > { %s3667_s14 = smov %s3659_s25 }
 0x3ce   : > { %s3669_s16 = smov %s3660_s4 }
 0x3d0   :  { %1997 = vsyncpa [#allocation8], 1 }
 0x3d1   :  { %1999 = vsyncpa [#allocation8 + $0x1], 1 }
 0x3d2   :  { %2000 = vsyncpa [#allocation11], 1 }
 0x3d3   :  { %2002 = vsyncpa [#allocation11 + $0x1], 1 }
 0x3d4   :  { %2003 = vsyncpa [#allocation14], 1 }
 0x3d5   :  { %2004 = vsyncpa [#allocation9], 1 }
 0x3d6   :  { %2006 = vsyncpa [#allocation9 + $0x1], 1 }

</bundles_post_ra>
